<compile_context>
chip_gen: v5e
topology: v5e:2x2
jax: 0.10.0
libtpu: 0.0.40
codegen_flags: <defaults>
</compile_context>

<pallas_src>
import jax
import jax.numpy as jnp
from jax.experimental import pallas as pl
from jax.experimental.pallas import tpu as pltpu


def _avgpool_embed_kernel(feat_ref, wt_ref, b_ref, net_ref, feas_ref):
    """Grid axis 0 tiles the C (input-feature / reduction) dimension.

    feat_ref: (N, HW, ck) f32   -- channels-last activation tile
    wt_ref:   (ck, E)    bf16   -- BN-folded W^T tile
    b_ref:    (1, E)     f32    -- BN-folded bias
    net_ref:  (N, E)     f32    -- resident output, used as the accumulator
    feas_ref: (N, ck)    f32    -- eval_feas tile (pooled features)
    """
    k = pl.program_id(0)

    # Initialize the resident output with the (BN-folded) bias.
    @pl.when(k == 0)
    def _():
        net_ref[...] = jnp.broadcast_to(b_ref[...], net_ref.shape)

    # Global average pool over the spatial (HW) axis: sublane reduce.
    pooled = jnp.mean(feat_ref[...], axis=1)                       # (N, ck) f32
    feas_ref[...] = pooled.astype(feas_ref.dtype)                  # eval_feas

    # Linear: accumulate pooled @ W'^T over C tiles (bf16 MXU, f32 accum).
    net_ref[...] += jnp.dot(pooled.astype(wt_ref.dtype), wt_ref[...],
                            preferred_element_type=jnp.float32)

    @pl.when(k == pl.num_programs(0) - 1)
    def _():
        # F.normalize(p=2, dim=1): y / max(||y||_2, 1e-12)  (rsqrt form)
        y = net_ref[...]
        sumsq = jnp.sum(y * y, axis=-1, keepdims=True)
        net_ref[...] = y * jax.lax.rsqrt(jnp.maximum(sumsq, 1e-24))
        # Dropout(p=0) is identity.


def end2end_avg_pooling(x, params, *, ck=512):
    """x: (N, C, H, W) backbone feature map. Returns (net, eval_feas).

    For best amortization of the weight stream, batch as many images as
    possible into a single call (larger N).
    """
    N, C, H, W = x.shape
    HW = H * W
    E = params["w_fold"].shape[1]
    ck = min(ck, C)
    assert C % ck == 0, "C must be divisible by the C-tile size"

    # Channels-last: put C on the 128-lane axis (lane-dense loads/stores);
    # pooling becomes a sublane reduce.  TODO(synk): in a real pipeline the
    # backbone should emit NHWC directly so this transpose disappears.
    feat = jnp.transpose(x.reshape(N, C, HW), (0, 2, 1))           # (N, HW, C)

    grid = (C // ck,)
    out_shape = (
        jax.ShapeDtypeStruct((N, E), jnp.float32),   # net
        jax.ShapeDtypeStruct((N, C), jnp.float32),   # eval_feas
    )

    grid_spec = pltpu.PrefetchScalarGridSpec(
        num_scalar_prefetch=0,
        grid=grid,
        in_specs=[
            pl.BlockSpec((N, HW, ck), lambda k: (0, 0, k)),        # feat
            pl.BlockSpec((ck, E), lambda k: (k, 0)),               # W' tile
            pl.BlockSpec((1, E), lambda k: (0, 0)),                # folded bias
        ],
        out_specs=[
            pl.BlockSpec((N, E), lambda k: (0, 0)),                # net (resident)
            pl.BlockSpec((N, ck), lambda k: (0, k)),               # eval_feas
        ],
        scratch_shapes=[],
    )

    net, eval_feas = pl.pallas_call(
        _avgpool_embed_kernel,
        out_shape=out_shape,
        grid_spec=grid_spec,
        compiler_params=pltpu.CompilerParams(
            dimension_semantics=("arbitrary",)),
    )(feat, params["w_fold"], params["b_fold"])
    return net, eval_feas


def init_params(key, input_feature_size, embeding_fea_size):
    """Deterministic init mirroring AvgPooling.__init__, with eval-mode BN
    folded into the linear weight/bias and the weight stored in bf16."""
    C, E = input_feature_size, embeding_fea_size
    # nn.init.kaiming_normal_(weight, mode='fan_out'): std = sqrt(2 / fan_out)
    std = (2.0 / E) ** 0.5
    w = jax.random.normal(key, (E, C), dtype=jnp.float32) * std    # Linear (E, C)
    bias = jnp.zeros((E,), jnp.float32)
    gamma = jnp.ones((E,), jnp.float32)
    beta = jnp.zeros((E,), jnp.float32)
    running_mean = jnp.zeros((E,), jnp.float32)
    running_var = jnp.ones((E,), jnp.float32)

    # Fold eval-mode BatchNorm1d into the linear:
    #   s = gamma / sqrt(var + eps);  W' = W * s;  b' = (bias - mean) * s + beta
    s = gamma * jax.lax.rsqrt(running_var + 1e-5)
    w_fold = (w * s[:, None]).T.astype(jnp.bfloat16)               # (C, E) bf16
    b_fold = ((bias - running_mean) * s + beta).reshape(1, E)      # (1, E) f32
    return {"w_fold": w_fold, "b_fold": b_fold}


def _reference(x, params):
    """Pure-JAX reference of the same forward (for validation).

    Uses the same bf16-quantized folded weight so the comparison isolates the
    kernel's tiling/fusion correctness."""
    N, C, H, W = x.shape
    pooled = jnp.mean(x.reshape(N, C, H * W), axis=-1)             # GAP + view
    y = jnp.dot(pooled.astype(jnp.bfloat16), params["w_fold"],
                preferred_element_type=jnp.float32) + params["b_fold"]
    sumsq = jnp.sum(y * y, axis=-1, keepdims=True)
    y = y * jax.lax.rsqrt(jnp.maximum(sumsq, 1e-24))
    return y, pooled


if __name__ == "__main__":
    # Small shapes consistent with the module structure (real model uses
    # C=2048 backbone features, E=2048 embedding, HW=49).
    N, C, H, W = 8, 1024, 4, 4
    E = 1024

    key = jax.random.PRNGKey(0)
    kx, kw = jax.random.split(key)
    x = jax.random.normal(kx, (N, C, H, W), dtype=jnp.float32)
    params = init_params(kw, input_feature_size=C, embeding_fea_size=E)

    net, eval_feas = end2end_avg_pooling(x, params, ck=512)
    net = jax.block_until_ready(net)
    eval_feas = jax.block_until_ready(eval_feas)

    net_ref, feas_ref = _reference(x, params)
    assert jnp.allclose(net, net_ref, atol=1e-3, rtol=1e-3), \
        float(jnp.max(jnp.abs(net - net_ref)))
    assert jnp.allclose(eval_feas, feas_ref, atol=1e-5, rtol=1e-5), \
        float(jnp.max(jnp.abs(eval_feas - feas_ref)))

    print("KERNEL_OK")
</pallas_src>

<mosaic_0001>
module attributes {stable_mosaic.version = 11 : i64} {
  func.func @_avgpool_embed_kernel(%arg0: i32, %arg1: memref<8x16x512xf32, #tpu.memory_space<vmem>>, %arg2: memref<512x1024xbf16, #tpu.memory_space<vmem>>, %arg3: memref<1x1024xf32, #tpu.memory_space<vmem>>, %arg4: memref<8x1024xf32, #tpu.memory_space<vmem>>, %arg5: memref<8x512xf32, #tpu.memory_space<vmem>>) attributes {dimension_semantics = [#tpu.dimension_semantics<arbitrary>], iteration_bounds = array<i64: 2>, scalar_prefetch = 0 : i64, scratch_operands = 0 : i64, tpu.core_type = #tpu.core_type<tc>, window_params = [{transform_indices = @transform_0, window_bounds = array<i64: 8, 16, 512>}, {transform_indices = @transform_1, window_bounds = array<i64: 512, 1024>}, {pipeline_mode = #tpu.pipeline_mode<synchronous>, transform_indices = @transform_2, window_bounds = array<i64: 1, 1024>}, {pipeline_mode = #tpu.pipeline_mode<synchronous>, transform_indices = @transform_3, window_bounds = array<i64: 8, 1024>}, {transform_indices = @transform_4, window_bounds = array<i64: 8, 512>}]} {
    %c0_i32 = arith.constant 0 : i32
    %0 = arith.cmpi eq, %arg0, %c0_i32 : i32
    %1 = arith.extui %0 : i1 to i32
    %c0_i32_0 = arith.constant 0 : i32
    %2 = arith.cmpi ne, %1, %c0_i32_0 : i32
    scf.if %2 {
      %c0_14 = arith.constant 0 : index
      %c0_15 = arith.constant 0 : index
      %17 = vector.load %arg3[%c0_14, %c0_15] : memref<1x1024xf32, #tpu.memory_space<vmem>>, vector<1x1024xf32>
      %18 = vector.shape_cast %17 : vector<1x1024xf32> to vector<1x1024xf32>
      %19 = vector.broadcast %18 : vector<1x1024xf32> to vector<8x1024xf32>
      %c0_16 = arith.constant 0 : index
      %c0_17 = arith.constant 0 : index
      %20 = vector.load %arg4[%c0_16, %c0_17] : memref<8x1024xf32, #tpu.memory_space<vmem>>, vector<8x1024xf32>
      tpu.vector_store %arg4[%c0_16, %c0_17], %19 {strides = array<i32>} : memref<8x1024xf32, #tpu.memory_space<vmem>>, vector<8x1024xf32>,
    } else {
    }
    %c0 = arith.constant 0 : index
    %c0_1 = arith.constant 0 : index
    %c0_2 = arith.constant 0 : index
    %3 = vector.load %arg1[%c0, %c0_1, %c0_2] : memref<8x16x512xf32, #tpu.memory_space<vmem>>, vector<8x16x512xf32>
    %cst = arith.constant dense<0.000000e+00> : vector<8x512xf32>
    %4 = vector.multi_reduction <add>, %3, %cst [1] : vector<8x16x512xf32> to vector<8x512xf32>
    %cst_3 = arith.constant 1.600000e+01 : f32
    %5 = vector.broadcast %cst_3 : f32 to vector<8x512xf32>
    %6 = arith.divf %4, %5 : vector<8x512xf32>
    %c0_4 = arith.constant 0 : index
    %c0_5 = arith.constant 0 : index
    %7 = vector.load %arg5[%c0_4, %c0_5] : memref<8x512xf32, #tpu.memory_space<vmem>>, vector<8x512xf32>
    tpu.vector_store %arg5[%c0_4, %c0_5], %6 {strides = array<i32>} : memref<8x512xf32, #tpu.memory_space<vmem>>, vector<8x512xf32>,
    %c0_6 = arith.constant 0 : index
    %c0_7 = arith.constant 0 : index
    %8 = vector.load %arg4[%c0_6, %c0_7] : memref<8x1024xf32, #tpu.memory_space<vmem>>, vector<8x1024xf32>
    %9 = arith.truncf %6 : vector<8x512xf32> to vector<8x512xbf16>
    %c0_8 = arith.constant 0 : index
    %c0_9 = arith.constant 0 : index
    %10 = vector.load %arg2[%c0_8, %c0_9] : memref<512x1024xbf16, #tpu.memory_space<vmem>>, vector<512x1024xbf16>
    %cst_10 = arith.constant dense<0.000000e+00> : vector<8x1024xf32>
    %11 = tpu.matmul %9, %10, %cst_10 {dimension_numbers = #tpu.dot_dimension_numbers<[1], [0], [0], [1], [0, 0, 1, 1], [], []>} : vector<8x512xbf16>, vector<512x1024xbf16>, vector<8x1024xf32> -> vector<8x1024xf32>
    %12 = arith.addf %8, %11 : vector<8x1024xf32>
    %c0_11 = arith.constant 0 : index
    %c0_12 = arith.constant 0 : index
    %13 = vector.load %arg4[%c0_11, %c0_12] : memref<8x1024xf32, #tpu.memory_space<vmem>>, vector<8x1024xf32>
    tpu.vector_store %arg4[%c0_11, %c0_12], %12 {strides = array<i32>} : memref<8x1024xf32, #tpu.memory_space<vmem>>, vector<8x1024xf32>,
    %c1_i32 = arith.constant 1 : i32
    %14 = arith.cmpi eq, %arg0, %c1_i32 : i32
    %15 = arith.extui %14 : i1 to i32
    %c0_i32_13 = arith.constant 0 : i32
    %16 = arith.cmpi ne, %15, %c0_i32_13 : i32
    scf.if %16 {
      %c0_14 = arith.constant 0 : index
      %c0_15 = arith.constant 0 : index
      %17 = vector.load %arg4[%c0_14, %c0_15] : memref<8x1024xf32, #tpu.memory_space<vmem>>, vector<8x1024xf32>
      %18 = arith.mulf %17, %17 : vector<8x1024xf32>
      %cst_16 = arith.constant dense<0.000000e+00> : vector<8xf32>
      %19 = vector.multi_reduction <add>, %18, %cst_16 [1] : vector<8x1024xf32> to vector<8xf32>
      %20 = vector.shape_cast %19 : vector<8xf32> to vector<8x1xf32>
      %cst_17 = arith.constant 1.000000e-24 : f32
      %21 = vector.broadcast %cst_17 : f32 to vector<8x1xf32>
      %22 = arith.maximumf %20, %21 : vector<8x1xf32>
      %23 = math.rsqrt %22 : vector<8x1xf32>
      %24 = vector.broadcast %23 : vector<8x1xf32> to vector<8x1024xf32>
      %25 = arith.mulf %17, %24 : vector<8x1024xf32>
      %c0_18 = arith.constant 0 : index
      %c0_19 = arith.constant 0 : index
      %26 = vector.load %arg4[%c0_18, %c0_19] : memref<8x1024xf32, #tpu.memory_space<vmem>>, vector<8x1024xf32>
      tpu.vector_store %arg4[%c0_18, %c0_19], %25 {strides = array<i32>} : memref<8x1024xf32, #tpu.memory_space<vmem>>, vector<8x1024xf32>,
    } else {
    }
    return
  }
  func.func @transform_0(%arg0: i32) -> (i32, i32, i32) {
    %c0_i32 = arith.constant 0 : i32
    %c0_i32_0 = arith.constant 0 : i32
    %c0_i32_1 = arith.constant 0 : i32
    return %c0_i32, %c0_i32_0, %arg0 : i32, i32, i32
  }
  func.func @transform_1(%arg0: i32) -> (i32, i32) {
    %c0_i32 = arith.constant 0 : i32
    %c0_i32_0 = arith.constant 0 : i32
    return %arg0, %c0_i32 : i32, i32
  }
  func.func @transform_2(%arg0: i32) -> (i32, i32) {
    %c0_i32 = arith.constant 0 : i32
    %c0_i32_0 = arith.constant 0 : i32
    %c0_i32_1 = arith.constant 0 : i32
    return %c0_i32, %c0_i32_0 : i32, i32
  }
  func.func @transform_3(%arg0: i32) -> (i32, i32) {
    %c0_i32 = arith.constant 0 : i32
    %c0_i32_0 = arith.constant 0 : i32
    %c0_i32_1 = arith.constant 0 : i32
    return %c0_i32, %c0_i32_0 : i32, i32
  }
  func.func @transform_4(%arg0: i32) -> (i32, i32) {
    %c0_i32 = arith.constant 0 : i32
    %c0_i32_0 = arith.constant 0 : i32
    return %c0_i32, %arg0 : i32, i32
  }
}

</mosaic_0001>

<bundles_post_ra>
// kernel: tpu_custom_call.1
= control target key start
LH: loop header
LB: loop body
LE: loop exit
PB: predicated region body
PF: predicated region fallthrough
CT: control target
= control target key end

     0   :  { %s5718_s0 = inlined_call_operand.hbm [shape: f32[8,16,1024], index: 0, kind: input, shape index: {}]   ;;  %s5719_s1 = inlined_call_operand.hbm [shape: bf16[1024,1024], index: 1, kind: input, shape index: {}]   ;;  %s5720_s2 = inlined_call_operand.hbm [shape: f32[1,1024], index: 2, kind: input, shape index: {}]   ;;  %s5721_s3 = inlined_call_operand.hbm [shape: f32[8,1024], index: 3, kind: output, shape index: {0}]   ;;  %s5722_s4 = inlined_call_operand.hbm [shape: f32[8,1024], index: 4, kind: output, shape index: {1}]  }
   0x1   :  { %5727 = sst [smem:[#allocation19_spill]] %s5718_s0 }
   0x2   :  { %5728 = sst [smem:[#allocation20_spill]] %s5720_s2 }
   0x3   :  { %10 = vsyncpa [#allocation3], 0 }
   0x4   :  { %12 = vsyncpa [#allocation3 + $0x1], 0 }
   0x5   :  { %13 = vsyncpa [#allocation6], 0 }
   0x6   :  { %15 = vsyncpa [#allocation6 + $0x1], 0 }
   0x7   :  { %16 = vsyncpa [#allocation4], 0 }
   0x8   :  { %17 = vsyncpa [#allocation10], 0 }
   0x9   :  { %19 = vsyncpa [#allocation10 + $0x1], 0  ;;  %s4633_s15 = smov 0   ;;  %s4635_s16 = smov 0  }
   0xa   :  { %s4637_s17 = smov 0   ;;  %s4639_s18 = smov 0  }
   0xb LB: > { %5729 = sst [smem:[#allocation16_spill]] %s4596_s17  ;;  %s4654_s19 = sadd.s32 4294967295, %s4600_s18   ;;  %s4600_s18 = sphi %s4639_s18, %s5745_s18   ;;  %s4596_s17 = sphi %s4637_s17, %s5747_s17   ;;  %s4592_s16 = sphi %s4635_s16, %s5749_s16   ;;  %s4588_s15 = sphi %s4633_s15, %s5748_s15  }
   0xc   : > { %s3018_s20 = sadd.s32 4294967294, %s4600_s18   ;;  %s4658_s21 = sadd.s32 1, %s4600_s18  }
   0xd   : > { %5730 = sst [smem:[#allocation17_spill]] %s4658_s21  ;;  %s32_s22 = sadd.s32 1, %s4596_s17 }
   0xe   : > { %s29_s23 = ssub.s32 %s4600_s18, %s4658_s21  ;;  %p39_p0 = scmp.ne.s32.totalorder %s4596_s17, %s4592_s16 }
   0xf   : > { %p30_p1 = scmp.eq.s32.totalorder %s29_s23, 0  ;;  %p40_p2 = scmp.eq.s32.totalorder %s4600_s18, 0 }
  0x10   : > { %p45_p3 = scmp.ne.s32.totalorder %s4592_s16, %s4588_s15  ;;  %p46_p4 = scmp.eq.s32.totalorder %s4654_s19, 0 }
  0x11   : > { %s4670_s24 = scalar_select %p30_p1, %s4596_s17, %s32_s22  }
  0x12   : > { %p4672_p5 = por %p40_p2, %p39_p0  ;;  %p4678_p6 = por %p46_p4, %p45_p3 }
  0x13   : > { %5731 = sst [smem:[#allocation18_spill]] %s4670_s24  ;;  %p5723_p7 = scmp.eq.s32.totalorder %s4654_s19, 1 }
  0x14   : > { %p143_p8 = scmp.eq.s32.totalorder %s3018_s20, 1  ;;  %p3019_p9 = scmp.ge.s32.totalorder %s4600_s18, 1 }
  0x15   : > { %p150_p10 = scmp.lt.s32.totalorder %s4600_s18, 3  ;;  %p4687_p11 = por %p5723_p7, %p39_p0 }
  0x16   : > { %p4691_p12 = por %p143_p8, %p45_p3  ;;  %s5737_s2 = sld [smem:[#allocation20_spill]] }
  0x17   : > { %p4695_p13 = pnand %p3019_p9, %p150_p10  ;;  %s4602_s7 = smov [#allocation7]  }
  0x18   : > { %s164_s8 = sshll.u32 %s4602_s7, 4  ;;  %p4357_p8 = scmp.lt.s32.totalorder %s4600_s18, 2  ;;  %s165_s8 = int_to_ptr.vmem [resolvable:$true] %s164_s8 }
  0x19   : > { %p4341_p0 = pneg %p4695_p13  ;;  %s4710_s9 = sand.u32 1, %s4596_s17  }
  0x1a   : > { %p4714_p9 = pnand %p4357_p8, %p4672_p5  ;;  %s3022_s11 = sshll.u32 %s4710_s9, 9 }
  0x1b   : > { %p4342_p3 = pnand %p4341_p0, %p46_p4  ;;  %s4067_s12 = sshll.u32 %s4600_s18, 5 }
  0x1c   : > { %s162_s6 = sshll.u32 %s5737_s2, 4  ;;  %s5739_s0 = sld [smem:[#allocation19_spill]]  ;;  %s163_s6 = int_to_ptr.hbm [resolvable:$true] %s162_s6 }
  0x1d   : > { %4344 = dma.hbm_to_vmem [thread:$0]  (!%p4342_p3), %s163_s6, 128, %s165_s8, [#allocation6]  }
  0x1e   : > { %s179_s23 = scalar_lea.vmem [#allocation2], %s3022_s11  ;;  %s197_s5 = sand.u32 1, %s4600_s18  }
  0x1f   : > { %s187_s30 = sshll.u32 %s179_s23, 4  ;;  %s176_s6 = scalar_lea.sflag [#allocation3], %s4710_s9  ;;  %s188_s30 = int_to_ptr.vmem [resolvable:$true] %s187_s30 }
  0x20   : > { %p4438_p10 = pneg %p4714_p9 }
  0x22   : > { %s184_s20 = scalar_lea.hbm %s5739_s0, %s4067_s12  ;;  %s4441_s12 = scalar_lea.hbm %s5739_s0, 1024 }
  0x23   : > { %s185_s22 = sshll.u32 %s184_s20, 4  ;;  %s186_s22 = int_to_ptr.hbm [resolvable:$true] %s185_s22 }
  0x24   : > { %s4434_s25 = sshra.s32 %s186_s22, 4  ;;  %s4435_s25 = int_to_ptr.hbm [resolvable:$true] %s4434_s25 }
  0x25   : > { %s4436_s7 = scalar_lea.hbm %s4435_s25, 512  ;;  %p4442_p8 = scmp.lt.s32.totalorder %s4435_s25, %s5739_s0 }
  0x26   : > { %p4437_p5 = scmp.ne.s32.totalorder %s4435_s25, %s4436_s7  ;;  %p4443_p2 = scmp.lt.s32.totalorder %s4441_s12, %s4436_s7 }
  0x28   : > { %p4439_p0 = pnand %p4438_p10, %p4437_p5  ;;  %p4444_p7 = por %p4443_p2, %p4442_p8 }
  0x2a   : > { %p4440_p3 = pneg %p4439_p0 }
  0x2c   : > { %p4445_p1 = pnand %p4444_p7, %p4440_p3 }
  0x2e   : > { %4448 = shalt.err (!%p4445_p1)
}
  0x2f   : > { %s4603_s20 = smov 1024   ;;  %s4604_s23 = smov 512  }
  0x30   : > { %s4605_s2 = smov 32   ;;  %s3025_s24 = sshll.u32 %s4710_s9, 11 }
  0x31   : > { %4348 = dma.hbm_to_vmem [thread:$0]  (!%p4714_p9), %s186_s22, 8192, %s188_s30, %s176_s6, %s4603_s20, %s4604_s23, %s4605_s2  }
  0x32   : > { %s4069_s8 = sshll.u32 %s4600_s18, 11  ;;  %s201_s25 = scalar_lea.vmem [#allocation5], %s3025_s24 }
  0x33   : > { %s207_s11 = scalar_lea.hbm %s5719_s1, %s4069_s8  ;;  %s210_s7 = sshll.u32 %s201_s25, 4  ;;  %s211_s7 = int_to_ptr.vmem [resolvable:$true] %s210_s7 }
  0x34   : > { %s208_s12 = sshll.u32 %s207_s11, 4  ;;  %s198_s14 = scalar_lea.sflag [#allocation6], %s197_s5  ;;  %s209_s12 = int_to_ptr.hbm [resolvable:$true] %s208_s12 }
  0x35   : > { %s4464_s0 = sshra.s32 %s209_s12, 4  ;;  %s4471_s30 = scalar_lea.hbm %s5719_s1, 4096  ;;  %s4465_s0 = int_to_ptr.hbm [resolvable:$true] %s4464_s0 }
  0x36   : > { %s4466_s21 = scalar_lea.hbm %s4465_s0, 2048  ;;  %p4472_p5 = scmp.lt.s32.totalorder %s4465_s0, %s5719_s1 }
  0x37   : > { %p4467_p7 = scmp.ne.s32.totalorder %s4465_s0, %s4466_s21  ;;  %p4473_p0 = scmp.lt.s32.totalorder %s4471_s30, %s4466_s21 }
  0x39   : > { %p4469_p1 = pnand %p4467_p7, %p4438_p10  ;;  %p4474_p3 = por %p4473_p0, %p4472_p5 }
  0x3b   : > { %p4470_p2 = pneg %p4469_p1 }
  0x3d   : > { %p4475_p8 = pnand %p4474_p3, %p4470_p2 }
  0x3f   : > { %4478 = shalt.err (!%p4475_p8)
}
  0x40   : > { %4351 = dma.hbm_to_vmem [thread:$0]  (!%p4714_p9), %s209_s12, 32768, %s211_s7, %s198_s14, %s4604_s23, %s4604_s23, %s4605_s2  }
  0x41   : > { %222 = sbr.rel (%p4695_p13) target bundleno = 801 (0x321), region = 32  ;;  %s4757_s24 = sand.u32 (!%p4695_p13), 1, %s4592_s16  }
  0x42   : > { %s3030_s5 = sshll.u32 (!%p4695_p13), %s4757_s24, 9  ;;  %s225_s20 = scalar_lea.sflag (!%p4695_p13), [#allocation3], %s4757_s24 }
  0x43   : > { %s4761_s8 = scalar_lea.vmem (!%p4695_p13), [#allocation2], %s3030_s5 }
  0x46   : > { %4567 = dma.done.wait (%p4678_p6), %s225_s20, 8192  }
  0x47   : > { %4569 = vsyncadd (%p4678_p6), %s225_s20, 4294959104  ;;  %s234_s0 = sand.u32 1, %s4654_s19   ;;  %s3031_s2 = sshll.u32 %s4757_s24, 11 }
  0x48   : > { %s235_s21 = scalar_lea.sflag [#allocation6], %s234_s0  ;;  %s4769_s29 = scalar_lea.vmem [#allocation5], %s3031_s2 }
  0x49   : > { %4571 = dma.done.wait (%p4678_p6), %s235_s21, 32768  }
  0x4a   : > { %4573 = vsyncadd (%p4678_p6), %s235_s21, 4294934528 }
  0x4b   : > { %4575 = dma.done.wait (%p46_p4), [#allocation6], 128  }
  0x4c   : > { %4577 = vsyncadd (%p46_p4), [#allocation6], 4294967168  ;;  %s3033_s10 = sshll.u32 %s4757_s24, 5  ;;  %p5740_p13 = scmp.ne.s32.totalorder %s4654_s19, 0 }
  0x4d   : > { %s4780_s23 = scalar_lea.vmem [#allocation9], %s3033_s10 }
  0x4e   : > { %280 = sbr.rel (%p5740_p13) target bundleno = 94 (0x5e), region = 48 }
  0x53   : > { %v281_v0 = vld [vmem:[#allocation7] sm:$0xff] }
  0x54   : > { %v283_v1 = vperm.slane %v281_v0, 0  ;;  %v284_v2 = vperm.slane %v281_v0, 1  ;;  %v285_v3 = vperm.slane %v281_v0, 2  ;;  %v286_v4 = vperm.slane %v281_v0, 3 }
  0x55   : > { %v287_v5 = vperm.slane %v281_v0, 4  ;;  %v288_v6 = vperm.slane %v281_v0, 5  ;;  %v289_v7 = vperm.slane %v281_v0, 6  ;;  %v290_v8 = vperm.slane %v281_v0, 7 }
  0x56   : > { %299 = vst [vmem:[#allocation8] sm:$0xff] %v283_v1 }
  0x57   : > { %300 = vst [vmem:[#allocation8 + $0x8] sm:$0xff] %v284_v2 }
  0x58   : > { %301 = vst [vmem:[#allocation8 + $0x10] sm:$0xff] %v285_v3 }
  0x59   : > { %302 = vst [vmem:[#allocation8 + $0x18] sm:$0xff] %v286_v4 }
  0x5a   : > { %303 = vst [vmem:[#allocation8 + $0x20] sm:$0xff] %v287_v5 }
  0x5b   : > { %304 = vst [vmem:[#allocation8 + $0x28] sm:$0xff] %v288_v6 }
  0x5c   : > { %305 = vst [vmem:[#allocation8 + $0x30] sm:$0xff] %v289_v7 }
  0x5d   : > { %306 = vst [vmem:[#allocation8 + $0x38] sm:$0xff] %v290_v8 }
  0x5e PF: > { %v3261_v9 = vld [vmem:[%s4769_s29 + $0x1c0] sm:$0xf]  ;;  %vm666_vm1 = vcmask 1041409   ;;  %vm668_vm2 = vcmask 1042434   ;;  %vm670_vm3 = vcmask 1043459   ;;  %vm672_vm4 = vcmask 1044484  }
  0x5f   : > { %v4130_v10 = vld [vmem:[%s4769_s29 + $0x1dc] sm:$0xf0]  ;;  %vm674_vm5 = vcmask 1045509   ;;  %vm676_vm6 = vcmask 1046534   ;;  %vm678_vm7 = vcmask 1047559   ;;  %p4059_p4 = scmp.ne.s32.totalorder %s4654_s19, 1 }
  0x60   : > { %v3517_v11 = vld [vmem:[%s4769_s29 + $0x3c0] sm:$0xf]  ;;  %v3262_v12 = vor.u32 %v4130_v10, %v3261_v9 }
  0x61   : > { %v4194_v13 = vld [vmem:[%s4769_s29 + $0x3dc] sm:$0xf0] }
  0x62   : > { %v3773_v14 = vld [vmem:[%s4769_s29 + $0x5c0] sm:$0xf]  ;;  %v3518_v16 = vor.u32 %v4194_v13, %v3517_v11  ;;  %2385 = vmatpush.bf16.msra.mxu0 %v3262_v12 }
  0x63   : > { %v4258_v15 = vld [vmem:[%s4769_s29 + $0x5dc] sm:$0xf0] }
  0x64   : > { %v3774_v17 = vor.u32 %v4258_v15, %v3773_v14  ;;  %v4029_v18 = vld [vmem:[%s4769_s29 + $0x7c0] sm:$0xf]  ;;  %2398 = vmatpush.bf16.msra.mxu1 %v3518_v16 }
  0x65   : > { %v4322_v19 = vld [vmem:[%s4769_s29 + $0x7dc] sm:$0xf0] }
  0x66   : > { %v3229_v20 = vld [vmem:[%s4769_s29 + $0x180] sm:$0xf]  ;;  %v4030_v21 = vor.u32 %v4322_v19, %v4029_v18  ;;  %2411 = vmatpush.bf16.msra.mxu2 %v3774_v17 }
  0x67   : > { %v4122_v22 = vld [vmem:[%s4769_s29 + $0x19c] sm:$0xf0] }
  0x68   : > { %v3485_v23 = vld [vmem:[%s4769_s29 + $0x380] sm:$0xf]  ;;  %v3230_v25 = vor.u32 %v4122_v22, %v3229_v20  ;;  %2424 = vmatpush.bf16.msra.mxu3 %v4030_v21 }
  0x69   : > { %v4186_v24 = vld [vmem:[%s4769_s29 + $0x39c] sm:$0xf0] }
  0x6a   : > { %v3486_v26 = vor.u32 %v4186_v24, %v3485_v23  ;;  %v3741_v27 = vld [vmem:[%s4769_s29 + $0x580] sm:$0xf]  ;;  %2386 = vmatpush.bf16.msra.mxu0 %v3230_v25 }
  0x6b   : > { %v4250_v28 = vld [vmem:[%s4769_s29 + $0x59c] sm:$0xf0] }
  0x6c   : > { %v3997_v29 = vld [vmem:[%s4769_s29 + $0x780] sm:$0xf]  ;;  %v3742_v30 = vor.u32 %v4250_v28, %v3741_v27  ;;  %2399 = vmatpush.bf16.msra.mxu1 %v3486_v26 }
  0x6d   : > { %v4314_v31 = vld [vmem:[%s4769_s29 + $0x79c] sm:$0xf0] }
  0x6e   : > { %v3197_v32 = vld [vmem:[%s4769_s29 + $0x140] sm:$0xf]  ;;  %v3998_v34 = vor.u32 %v4314_v31, %v3997_v29  ;;  %2412 = vmatpush.bf16.msra.mxu2 %v3742_v30 }
  0x6f   : > { %v4114_v33 = vld [vmem:[%s4769_s29 + $0x15c] sm:$0xf0] }
  0x70   : > { %v3453_v35 = vld [vmem:[%s4769_s29 + $0x340] sm:$0xf]  ;;  %v3198_v38 = vor.u32 %v4114_v33, %v3197_v32  ;;  %2425 = vmatpush.bf16.msra.mxu3 %v3998_v34 }
  0x71   : > { %v4178_v36 = vld [vmem:[%s4769_s29 + $0x35c] sm:$0xf0] }
  0x72   : > { %v3709_v37 = vld [vmem:[%s4769_s29 + $0x540] sm:$0xf]  ;;  %v3454_v42 = vor.u32 %v4178_v36, %v3453_v35  ;;  %2387 = vmatpush.bf16.msra.mxu0 %v3198_v38  ;;  %v3263_v38 = vld [vmem:[%s4769_s29 + $0x1e0] sm:$0xf0] }
  0x73   : > { %v4242_v39 = vld [vmem:[%s4769_s29 + $0x55c] sm:$0xf0] }
  0x74   : > { %v3965_v40 = vld [vmem:[%s4769_s29 + $0x740] sm:$0xf]  ;;  %v3710_v43 = vor.u32 %v4242_v39, %v3709_v37  ;;  %2400 = vmatpush.bf16.msra.mxu1 %v3454_v42  ;;  %v4126_v37 = vld [vmem:[%s4769_s29 + $0x1c4] sm:$0xf] }
  0x75   : > { %v4306_v41 = vld [vmem:[%s4769_s29 + $0x75c] sm:$0xf0]  ;;  %v4190_v39 = vld [vmem:[%s4769_s29 + $0x3c4] sm:$0xf] }
  0x76   : > { %v3165_v44 = vld [vmem:[%s4769_s29 + $0x100] sm:$0xf]  ;;  %v3966_v47 = vor.u32 %v4306_v41, %v3965_v40  ;;  %2413 = vmatpush.bf16.msra.mxu2 %v3710_v43  ;;  %v3519_v40 = vld [vmem:[%s4769_s29 + $0x3e0] sm:$0xf0] }
  0x77   : > { %v4106_v45 = vld [vmem:[%s4769_s29 + $0x11c] sm:$0xf0]  ;;  %v4254_v42 = vld [vmem:[%s4769_s29 + $0x5c4] sm:$0xf] }
  0x78   : > { %v3421_v46 = vld [vmem:[%s4769_s29 + $0x300] sm:$0xf]  ;;  %v3166_v53 = vor.u32 %v4106_v45, %v3165_v44  ;;  %2426 = vmatpush.bf16.msra.mxu3 %v3966_v47  ;;  %v3775_v43 = vld [vmem:[%s4769_s29 + $0x5e0] sm:$0xf0] }
  0x79   : > { %v4170_v48 = vld [vmem:[%s4769_s29 + $0x31c] sm:$0xf0]  ;;  %v4318_v44 = vld [vmem:[%s4769_s29 + $0x7c4] sm:$0xf] }
  0x7a   : > { %v3677_v49 = vld [vmem:[%s4769_s29 + $0x500] sm:$0xf]  ;;  %v3422_v54 = vor.u32 %v4170_v48, %v3421_v46  ;;  %2388 = vmatpush.bf16.msra.mxu0 %v3166_v53  ;;  %v4031_v47 = vld [vmem:[%s4769_s29 + $0x7e0] sm:$0xf0] }
  0x7b   : > { %v4234_v50 = vld [vmem:[%s4769_s29 + $0x51c] sm:$0xf0]  ;;  %v4118_v48 = vld [vmem:[%s4769_s29 + $0x184] sm:$0xf] }
  0x7c   : > { %v3933_v51 = vld [vmem:[%s4769_s29 + $0x700] sm:$0xf]  ;;  %v3678_v55 = vor.u32 %v4234_v50, %v3677_v49  ;;  %2401 = vmatpush.bf16.msra.mxu1 %v3422_v54  ;;  %v3231_v49 = vld [vmem:[%s4769_s29 + $0x1a0] sm:$0xf0] }
  0x7d   : > { %v4298_v52 = vld [vmem:[%s4769_s29 + $0x71c] sm:$0xf0]  ;;  %v4862_v53 = vld [vmem:[%s4769_s29 + $0x3a0] sm:$0xf0] }
  0x7e   : > { %v3133_v56 = vld [vmem:[%s4769_s29 + $0xc0] sm:$0xf]  ;;  %v3934_v59 = vor.u32 %v4298_v52, %v3933_v51  ;;  %2414 = vmatpush.bf16.msra.mxu2 %v3678_v55  ;;  %v3266_v51 = vor.u32 %v4126_v37, %v3263_v38  ;;  %v4859_v52 = vld [vmem:[%s4769_s29 + $0x384] sm:$0xf] }
  0x7f   : > { %v4098_v57 = vld [vmem:[%s4769_s29 + $0xdc] sm:$0xf0]  ;;  %v4865_v54 = vld [vmem:[%s4769_s29 + $0x584] sm:$0xf] }
  0x80   : > { %v3389_v58 = vld [vmem:[%s4769_s29 + $0x2c0] sm:$0xf]  ;;  %v3134_v1 = vor.u32 %v4098_v57, %v3133_v56  ;;  %2427 = vmatpush.bf16.msra.mxu3 %v3934_v59  ;;  %v4868_v55 = vld [vmem:[%s4769_s29 + $0x5a0] sm:$0xf0]  ;;  %v3522_v56 = vor.u32 %v4190_v39, %v3519_v40  ;;  %v3778_v57 = vor.u32 %v4254_v42, %v3775_v43  ;;  %v309_v42 = vld [vmem:[%s4761_s8 + $0x10] sm:$0xff] }
  0x81   : > { %v4162_v60 = vld [vmem:[%s4769_s29 + $0x2dc] sm:$0xf0]  ;;  %v4874_v59 = vld [vmem:[%s4769_s29 + $0x7a0] sm:$0xf0]  ;;  %v313_v43 = vld [vmem:[%s4761_s8 + $0x30] sm:$0xff] }
  0x82   : > { %v3645_v61 = vld [vmem:[%s4769_s29 + $0x4c0] sm:$0xf]  ;;  %v3390_v2 = vor.u32 %v4162_v60, %v3389_v58  ;;  %2389 = vmatpush.bf16.msra.mxu0 %v3134_v1  ;;  %v4871_v58 = vld [vmem:[%s4769_s29 + $0x784] sm:$0xf] }
  0x83   : > { %v4226_v62 = vld [vmem:[%s4769_s29 + $0x4dc] sm:$0xf0]  ;;  %v4877_v60 = vld [vmem:[%s4769_s29 + $0x144] sm:$0xf] }
  0x84   : > { %v3901_v63 = vld [vmem:[%s4769_s29 + $0x6c0] sm:$0xf]  ;;  %v3646_v3 = vor.u32 %v4226_v62, %v3645_v61  ;;  %2402 = vmatpush.bf16.msra.mxu1 %v3390_v2  ;;  %v4880_v61 = vld [vmem:[%s4769_s29 + $0x160] sm:$0xf0]  ;;  %v4034_v62 = vor.u32 %v4318_v44, %v4031_v47  ;;  %v321_v47 = vld [vmem:[%s4761_s8 + $0x70] sm:$0xff] }
  0x85   : > { %v4290_v0 = vld [vmem:[%s4769_s29 + $0x6dc] sm:$0xf0]  ;;  %v4889_v1 = vld [vmem:[%s4769_s29 + $0x544] sm:$0xf] }
  0x86   : > { %v3101_v4 = vld [vmem:[%s4769_s29 + $0x80] sm:$0xf]  ;;  %v3902_v7 = vor.u32 %v4290_v0, %v3901_v63  ;;  %2415 = vmatpush.bf16.msra.mxu2 %v3646_v3  ;;  %v4883_v63 = vld [vmem:[%s4769_s29 + $0x344] sm:$0xf] }
  0x87   : > { %v4090_v5 = vld [vmem:[%s4769_s29 + $0x9c] sm:$0xf0]  ;;  %v4886_v0 = vld [vmem:[%s4769_s29 + $0x360] sm:$0xf0] }
  0x88   : > { %v3357_v6 = vld [vmem:[%s4769_s29 + $0x280] sm:$0xf]  ;;  %v3102_v13 = vor.u32 %v4090_v5, %v3101_v4  ;;  %2428 = vmatpush.bf16.msra.mxu3 %v3902_v7  ;;  %v4892_v2 = vld [vmem:[%s4769_s29 + $0x560] sm:$0xf0] }
  0x89   : > { %v4154_v8 = vld [vmem:[%s4769_s29 + $0x29c] sm:$0xf0]  ;;  %v4895_v3 = vld [vmem:[%s4769_s29 + $0x744] sm:$0xf] }
  0x8a   : > { %v3613_v9 = vld [vmem:[%s4769_s29 + $0x480] sm:$0xf]  ;;  %v3358_v14 = vor.u32 %v4154_v8, %v3357_v6  ;;  %2390 = vmatpush.bf16.msra.mxu0 %v3102_v13  ;;  %v4898_v4 = vld [vmem:[%s4769_s29 + $0x760] sm:$0xf0] }
  0x8b   : > { %v4218_v10 = vld [vmem:[%s4769_s29 + $0x49c] sm:$0xf0]  ;;  %v4901_v5 = vld [vmem:[%s4769_s29 + $0x104] sm:$0xf] }
  0x8c   : > { %v3869_v11 = vld [vmem:[%s4769_s29 + $0x680] sm:$0xf]  ;;  %v3614_v15 = vor.u32 %v4218_v10, %v3613_v9  ;;  %2403 = vmatpush.bf16.msra.mxu1 %v3358_v14  ;;  %v4904_v6 = vld [vmem:[%s4769_s29 + $0x120] sm:$0xf0] }
  0x8d   : > { %v4282_v12 = vld [vmem:[%s4769_s29 + $0x69c] sm:$0xf0]  ;;  %v4907_v7 = vld [vmem:[%s4769_s29 + $0x304] sm:$0xf] }
  0x8e   : > { %v3069_v16 = vld [vmem:[%s4769_s29 + $0x40] sm:$0xf]  ;;  %v3870_v19 = vor.u32 %v4282_v12, %v3869_v11  ;;  %2416 = vmatpush.bf16.msra.mxu2 %v3614_v15  ;;  %v4910_v8 = vld [vmem:[%s4769_s29 + $0x320] sm:$0xf0]  ;;  %v3234_v15 = vor.u32 %v4118_v48, %v3231_v49  ;;  %v325_v48 = vld [vmem:[%s4761_s8 + $0x90] sm:$0xff]  ;;  %v385_v49 = vadd.f32 %v313_v43, %v309_v42 }
  0x8f   : > { %v4082_v17 = vld [vmem:[%s4769_s29 + $0x5c] sm:$0xf0]  ;;  %v4913_v9 = vld [vmem:[%s4769_s29 + $0x504] sm:$0xf]  ;;  %v3426_v37 = vor.u32 %v4907_v7, %v4910_v8  ;;  %v365_v7 = vld [vmem:[%s4761_s8 + $0x1d0] sm:$0xff] }
  0x90   : > { %v3325_v18 = vld [vmem:[%s4769_s29 + $0x240] sm:$0xf]  ;;  %v3070_v25 = vor.u32 %v4082_v17, %v3069_v16  ;;  %2429 = vmatpush.bf16.msra.mxu3 %v3870_v19  ;;  %v4916_v10 = vld [vmem:[%s4769_s29 + $0x520] sm:$0xf0]  ;;  %v369_v8 = vld [vmem:[%s4761_s8 + $0x1f0] sm:$0xff] }
  0x91   : > { %v4146_v20 = vld [vmem:[%s4769_s29 + $0x25c] sm:$0xf0]  ;;  %v4919_v11 = vld [vmem:[%s4769_s29 + $0x704] sm:$0xf]  ;;  %v3682_v38 = vor.u32 %v4913_v9, %v4916_v10  ;;  %v581_v42 = vadd.f32 %v369_v8, %v365_v7 }
  0x92   : > { %v3581_v21 = vld [vmem:[%s4769_s29 + $0x440] sm:$0xf]  ;;  %v3326_v29 = vor.u32 %v4146_v20, %v3325_v18  ;;  %2391 = vmatpush.bf16.msra.mxu0 %v3070_v25  ;;  %v4922_v12 = vld [vmem:[%s4769_s29 + $0x720] sm:$0xf0]  ;;  %v3490_v20 = vor.u32 %v4859_v52, %v4862_v53  ;;  %v4002_v25 = vor.u32 %v4871_v58, %v4874_v59  ;;  %v329_v53 = vld [vmem:[%s4761_s8 + $0xb0] sm:$0xff] }
  0x93   : > { %v4210_v22 = vld [vmem:[%s4769_s29 + $0x45c] sm:$0xf0]  ;;  %v4925_v13 = vld [vmem:[%s4769_s29 + $0xc4] sm:$0xf]  ;;  %v3938_v39 = vor.u32 %v4919_v11, %v4922_v12  ;;  %v341_v58 = vld [vmem:[%s4761_s8 + $0x110] sm:$0xff] }
  0x94   : > { %v3837_v23 = vld [vmem:[%s4769_s29 + $0x640] sm:$0xf]  ;;  %v3582_v30 = vor.u32 %v4210_v22, %v3581_v21  ;;  %2404 = vmatpush.bf16.msra.mxu1 %v3326_v29  ;;  %v4928_v14 = vld [vmem:[%s4769_s29 + $0xe0] sm:$0xf0]  ;;  %v3746_v21 = vor.u32 %v4865_v54, %v4868_v55  ;;  %v333_v54 = vld [vmem:[%s4761_s8 + $0xd0] sm:$0xff] }
  0x95   : > { %v4274_v24 = vld [vmem:[%s4769_s29 + $0x65c] sm:$0xf0]  ;;  %v4931_v16 = vld [vmem:[%s4769_s29 + $0x2c4] sm:$0xf]  ;;  %v3138_v40 = vor.u32 %v4925_v13, %v4928_v14  ;;  %v337_v55 = vld [vmem:[%s4761_s8 + $0xf0] sm:$0xff] }
  0x96   : > { %v3037_v26 = vld [vmem:[%s4769_s29] sm:$0xf]  ;;  %v3838_v34 = vor.u32 %v4274_v24, %v3837_v23  ;;  %2417 = vmatpush.bf16.msra.mxu2 %v3582_v30  ;;  %v4934_v17 = vld [vmem:[%s4769_s29 + $0x2e0] sm:$0xf0]  ;;  %v3458_v30 = vor.u32 %v4883_v63, %v4886_v0  ;;  %v345_v59 = vld [vmem:[%s4761_s8 + $0x130] sm:$0xff]  ;;  %v469_v63 = vadd.f32 %v337_v55, %v333_v54 }
  0x97   : > { %v4074_v27 = vld [vmem:[%s4769_s29 + $0x1c] sm:$0xf0]  ;;  %v4937_v18 = vld [vmem:[%s4769_s29 + $0x4c4] sm:$0xf]  ;;  %v3394_v44 = vor.u32 %v4931_v16, %v4934_v17 }
  0x98   : > { %v3293_v28 = vld [vmem:[%s4769_s29 + $0x200] sm:$0xf]  ;;  %v3038_v41 = vor.u32 %v4074_v27, %v3037_v26  ;;  %2430 = vmatpush.bf16.msra.mxu3 %v3838_v34  ;;  %v4940_v19 = vld [vmem:[%s4769_s29 + $0x4e0] sm:$0xf0]  ;;  %v3202_v26 = vor.u32 %v4877_v60, %v4880_v61  ;;  %v349_v60 = vld [vmem:[%s4761_s8 + $0x150] sm:$0xff]  ;;  %v386_v61 = vrot.slane %v385_v49, 4 }
  0x99   : > { %v4138_v31 = vld [vmem:[%s4769_s29 + $0x21c] sm:$0xf0]  ;;  %v4947_v22 = vld [vmem:[%s4769_s29 + $0x6c4] sm:$0xf] }
  0x9a   : > { %v3549_v32 = vld [vmem:[%s4769_s29 + $0x400] sm:$0xf]  ;;  %v3294_v45 = vor.u32 %v4138_v31, %v3293_v28  ;;  %2392 = vmatpush.bf16.msra.mxu0 %v3038_v41  ;;  %v4950_v23 = vld [vmem:[%s4769_s29 + $0x6e0] sm:$0xf0]  ;;  %v3714_v31 = vor.u32 %v4889_v1, %v4892_v2  ;;  %v353_v1 = vld [vmem:[%s4761_s8 + $0x170] sm:$0xff]  ;;  %v387_v9 = vadd.f32 %v386_v61, %v385_v49 }
  0x9b   : > { %v4202_v33 = vld [vmem:[%s4769_s29 + $0x41c] sm:$0xf0]  ;;  %v4953_v24 = vld [vmem:[%s4769_s29 + $0x84] sm:$0xf]  ;;  %v357_v2 = vld [vmem:[%s4761_s8 + $0x190] sm:$0xff] }
  0x9c   : > { %v3805_v35 = vld [vmem:[%s4769_s29 + $0x600] sm:$0xf]  ;;  %v3550_v46 = vor.u32 %v4202_v33, %v3549_v32  ;;  %2405 = vmatpush.bf16.msra.mxu1 %v3294_v45  ;;  %v4960_v27 = vld [vmem:[%s4769_s29 + $0xa0] sm:$0xf0]  ;;  %v3970_v32 = vor.u32 %v4895_v3, %v4898_v4  ;;  %v3170_v33 = vor.u32 %v4901_v5, %v4904_v6  ;;  %v3650_v45 = vor.u32 %v4937_v18, %v4940_v19  ;;  %v361_v3 = vld [vmem:[%s4761_s8 + $0x1b0] sm:$0xff] }
  0x9d   : > { %v4266_v36 = vld [vmem:[%s4769_s29 + $0x61c] sm:$0xf0]  ;;  %v4963_v28 = vld [vmem:[%s4769_s29 + $0x284] sm:$0xf]  ;;  %v497_v5 = vadd.f32 %v345_v59, %v341_v58  ;;  %v4606_v6 = vmov 16.0   ;;  %v388_v43 = vrot.slane %v387_v9, 2 }
  0x9e   : > { %v3806_v50 = vor.u32 %v4266_v36, %v3805_v35  ;;  %2418 = vmatpush.bf16.msra.mxu2 %v3550_v46  ;;  %2437 = vmatpush.bf16.msrb.mxu0 %v3266_v51  ;;  %v4966_v29 = vld [vmem:[%s4769_s29 + $0x2a0] sm:$0xf0]  ;;  %v317_v46 = vld [vmem:[%s4761_s8 + $0x50] sm:$0xff]  ;;  %v3106_v51 = vor.u32 %v4953_v24, %v4960_v27  ;;  %4400 = vrcp.f32 %v4606_v6  ;;  %v318_v19 = vld [vmem:[%s4761_s8 + $0x58] sm:$0xff] }
  0x9f   : > { %v4977_v34 = vld [vmem:[%s4769_s29 + $0x484] sm:$0xf]  ;;  %v3362_v52 = vor.u32 %v4963_v28, %v4966_v29  ;;  %v389_v49 = vadd.f32 %v388_v43, %v387_v9  ;;  %v354_v27 = vld [vmem:[%s4761_s8 + $0x178] sm:$0xff] }
  0xa0   : > { %2431 = vmatpush.bf16.msra.mxu3 %v3806_v50  ;;  %2450 = vmatpush.bf16.msrb.mxu1 %v3522_v56  ;;  %v4980_v35 = vld [vmem:[%s4769_s29 + $0x4a0] sm:$0xf0]  ;;  %v3906_v50 = vor.u32 %v4947_v22, %v4950_v23  ;;  %v413_v56 = vadd.f32 %v321_v47, %v317_v46  ;;  %v334_v22 = vld [vmem:[%s4761_s8 + $0xd8] sm:$0xff] }
  0xa1   : > { %v4983_v36 = vld [vmem:[%s4769_s29 + $0x684] sm:$0xf]  ;;  %v338_v23 = vld [vmem:[%s4761_s8 + $0xf8] sm:$0xff] }
  0xa2   : > { %2463 = vmatpush.bf16.msrb.mxu2 %v3778_v57  ;;  %2438 = vmatpush.bf16.msrb.mxu0 %v3234_v15  ;;  %v4994_v41 = vld [vmem:[%s4769_s29 + $0x6a0] sm:$0xf0]  ;;  %v3618_v57 = vor.u32 %v4977_v34, %v4980_v35  ;;  %v414_v4 = vrot.slane %v413_v56, 4  ;;  %v470_v15 = vrot.slane %v469_v63, 4  ;;  %v362_v43 = vld [vmem:[%s4761_s8 + $0x1b8] sm:$0xff]  ;;  %v476_v29 = vadd.f32 %v338_v23, %v334_v22 }
  0xa3   : > { %v3874_v0 = vor.u32 %v4983_v36, %v4994_v41 }
  0xa4   : > { %2476 = vmatpush.bf16.msrb.mxu3 %v4034_v62  ;;  %2451 = vmatpush.bf16.msrb.mxu1 %v3490_v20  ;;  %v441_v62 = vadd.f32 %v329_v53, %v325_v48  ;;  %v525_v20 = vadd.f32 %v353_v1, %v349_v60  ;;  %v471_v47 = vadd.f32 %v470_v15, %v469_v63 }
  0xa6   : > { %2464 = vmatpush.bf16.msrb.mxu2 %v3746_v21  ;;  %2439 = vmatpush.bf16.msrb.mxu0 %v3202_v26  ;;  %v442_v10 = vrot.slane %v441_v62, 4  ;;  %v415_v21 = vadd.f32 %v414_v4, %v413_v56  ;;  %v553_v26 = vadd.f32 %v361_v3, %v357_v2  ;;  %v526_v48 = vrot.slane %v525_v20, 4  ;;  %v314_v4 = vld [vmem:[%s4761_s8 + $0x38] sm:$0xff] }
  0xa7   : > { %v472_v58 = vrot.slane %v471_v47, 2 }
  0xa8   : > { %2477 = vmatpush.bf16.msrb.mxu3 %v4002_v25  ;;  %2452 = vmatpush.bf16.msrb.mxu1 %v3458_v30  ;;  %v498_v25 = vrot.slane %v497_v5, 4  ;;  %v443_v46 = vadd.f32 %v442_v10, %v441_v62  ;;  %v416_v53 = vrot.slane %v415_v21, 2  ;;  %v554_v30 = vrot.slane %v553_v26, 4  ;;  %v330_v10 = vld [vmem:[%s4761_s8 + $0xb8] sm:$0xff] }
  0xa9   : > { %v527_v59 = vadd.f32 %v526_v48, %v525_v20  ;;  %v390_v62 = vrot.slane %v389_v49, 1 }
  0xaa   : > { %2465 = vmatpush.bf16.msrb.mxu2 %v3714_v31  ;;  %2440 = vmatpush.bf16.msrb.mxu0 %v3170_v33  ;;  %v499_v54 = vadd.f32 %v498_v25, %v497_v5  ;;  %v582_v31 = vrot.slane %v581_v42, 4  ;;  %v444_v55 = vrot.slane %v443_v46, 2  ;;  %v417_v56 = vadd.f32 %v416_v53, %v415_v21  ;;  %v326_v5 = vld [vmem:[%s4761_s8 + $0x98] sm:$0xff] }
  0xab   : > { %v555_v61 = vadd.f32 %v554_v30, %v553_v26  ;;  %v5040_v12 = vadd.f32 %v390_v62, %v389_v49  ;;  %v342_v21 = vld [vmem:[%s4761_s8 + $0x118] sm:$0xff]  ;;  %v448_v28 = vadd.f32 %v330_v10, %v326_v5  ;;  %v477_v30 = vrot.slane %v476_v29, 4 }
  0xac   : > { %2478 = vmatpush.bf16.msrb.mxu3 %v3970_v32  ;;  %2453 = vmatpush.bf16.msrb.mxu1 %v3426_v37  ;;  %v5026_v32 = vpop.eup %4400  ;;  %v500_v60 = vrot.slane %v499_v54, 2  ;;  %v583_v33 = vadd.f32 %v582_v31, %v581_v42  ;;  %v445_v63 = vadd.f32 %v444_v55, %v443_v46  ;;  %v473_v37 = vadd.f32 %v472_v58, %v471_v47  ;;  %v346_v25 = vld [vmem:[%s4761_s8 + $0x138] sm:$0xff] }
  0xad   : > { %v418_v1 = vrot.slane %v417_v56, 1  ;;  %v556_v3 = vrot.slane %v555_v61, 2  ;;  %v596_v9 = vmul.f32 16.0, %v5026_v32  ;;  %vm600_vm0 = vweird.f32 %v5026_v32  ;;  %v350_v26 = vld [vmem:[%s4761_s8 + $0x158] sm:$0xff] }
  0xae   : > { %2466 = vmatpush.bf16.msrb.mxu2 %v3682_v38  ;;  %v528_v38 = vrot.slane %v527_v59, 2  ;;  %2441 = vmatpush.bf16.msrb.mxu0 %v3138_v40  ;;  %v501_v2 = vadd.f32 %v500_v60, %v499_v54  ;;  %v584_v11 = vrot.slane %v583_v33, 2  ;;  %v474_v13 = vrot.slane %v473_v37, 1  ;;  %v310_v40 = vld [vmem:[%s4761_s8 + $0x18] sm:$0xff] }
  0xaf   : > { %v5047_v16 = vadd.f32 %v418_v1, %v417_v56  ;;  %v597_v24 = vsub.f32 1.0, %v596_v9  ;;  %v392_v46 = vadd.f32 %v314_v4, %v310_v40  ;;  %v449_v54 = vrot.slane %v448_v28, 4 }
  0xb0   : > { %2479 = vmatpush.bf16.msrb.mxu3 %v3938_v39  ;;  %2454 = vmatpush.bf16.msrb.mxu1 %v3394_v44  ;;  %v446_v39 = vrot.slane %v445_v63, 1  ;;  %v529_v14 = vadd.f32 %v528_v38, %v527_v59  ;;  %v502_v17 = vrot.slane %v501_v2, 1  ;;  %v557_v44 = vadd.f32 %v556_v3, %v555_v61 }
  0xb1   : > { %v585_v18 = vadd.f32 %v584_v11, %v583_v33  ;;  %v475_v7 = vadd.f32 %v474_v13, %v473_v37  ;;  %v598_v34 = vmul.f32 %v5026_v32, %v597_v24  ;;  %v393_v35 = vrot.slane %v392_v46, 4 }
  0xb2   : > { %2467 = vmatpush.bf16.msrb.mxu2 %v3650_v45  ;;  %v322_v45 = vld [vmem:[%s4761_s8 + $0x78] sm:$0xff]  ;;  %v447_v6 = vadd.f32 %v446_v39, %v445_v63  ;;  %v530_v8 = vrot.slane %v529_v14, 1  ;;  %2442 = vmatpush.bf16.msrb.mxu0 %v3106_v51  ;;  %v558_v15 = vrot.slane %v557_v44, 1  ;;  %v532_v31 = vadd.f32 %v354_v27, %v350_v26 }
  0xb3   : > { %v586_v20 = vrot.slane %v585_v18, 1  ;;  %v358_v51 = vld [vmem:[%s4761_s8 + $0x198] sm:$0xff]  ;;  %v420_v47 = vadd.f32 %v322_v45, %v318_v19  ;;  %v599_v36 = vadd.f32 %v5026_v32, %v598_v34  ;;  %v394_v41 = vadd.f32 %v393_v35, %v392_v46 }
  0xb4   : > { %2480 = vmatpush.bf16.msrb.mxu3 %v3906_v50  ;;  %v503_v50 = vadd.f32 %v502_v17, %v501_v2  ;;  %2455 = vmatpush.bf16.msrb.mxu1 %v3362_v52  ;;  %v531_v42 = vadd.f32 %v530_v8, %v529_v14  ;;  %v559_v48 = vadd.f32 %v558_v15, %v557_v44  ;;  %v533_v56 = vrot.slane %v532_v31, 4  ;;  %v366_v35 = vld [vmem:[%s4761_s8 + $0x1d8] sm:$0xff] }
  0xb5   : > { %v587_v53 = vadd.f32 %v586_v20, %v585_v18  ;;  %v421_v52 = vrot.slane %v420_v47, 4  ;;  %v5076_v49 = vadd.f32 %v362_v43, %v358_v51  ;;  %v450_v58 = vadd.f32 %v449_v54, %v448_v28 }
  0xb6   : > { %2468 = vmatpush.bf16.msrb.mxu2 %v3618_v57  ;;  %v504_v57 = vadd.f32 %v346_v25, %v342_v21  ;;  %v478_v59 = vadd.f32 %v477_v30, %v476_v29  ;;  %v5083_v61 = vsel %vm600_vm0, %v5026_v32, %v599_v36  ;;  %v395_v33 = vrot.slane %v394_v41, 2 }
  0xb7   : > { %v561_v60 = vrot.slane %v5076_v49, 4  ;;  %v604_v37 = vmul.f32 %v5083_v61, %v5040_v12  ;;  %v608_v38 = vmul.f32 %v5083_v61, %v5047_v16  ;;  %v612_v1 = vmul.f32 %v5083_v61, %v447_v6 }
  0xb8   : > { %2481 = vmatpush.bf16.msrb.mxu3 %v3874_v0  ;;  %v422_v0 = vadd.f32 %v421_v52, %v420_v47  ;;  %v505_v55 = vrot.slane %v504_v57, 4  ;;  %v616_v2 = vmul.f32 %v5083_v61, %v475_v7  ;;  %v620_v3 = vmul.f32 %v5083_v61, %v503_v50  ;;  %v370_v52 = vld [vmem:[%s4761_s8 + $0x1f8] sm:$0xff] }
  0xb9   : > { %v624_v11 = vmul.f32 %v5083_v61, %v531_v42  ;;  %v628_v32 = vmul.f32 %v5083_v61, %v559_v48  ;;  %v632_v39 = vmul.f32 %v5083_v61, %v587_v53  ;;  %v687_v13 = vsel %vm666_vm1, %v608_v38, %v604_v37 }
  0xba   : > { %v423_v62 = vrot.slane %v422_v0, 2  ;;  %v506_v63 = vadd.f32 %v505_v55, %v504_v57  ;;  %v719_v14 = vpack.c.bf16 %v604_v37, %v604_v37  ;;  %v723_v40 = vpack.c.bf16 %v608_v38, %v608_v38 }
  0xbb   : > { %v727_v12 = vpack.c.bf16 %v612_v1, %v612_v1  ;;  %v688_v4 = vsel %vm668_vm2, %v612_v1, %v687_v13  ;;  %v731_v16 = vpack.c.bf16 %v616_v2, %v616_v2  ;;  %v735_v17 = vpack.c.bf16 %v620_v3, %v620_v3 }
  0xbc   : > { %v739_v44 = vpack.c.bf16 %v624_v11, %v624_v11  ;;  %v689_v18 = vsel %vm670_vm3, %v616_v2, %v688_v4  ;;  %v743_v19 = vpack.c.bf16 %v628_v32, %v628_v32  ;;  %v747_v45 = vpack.c.bf16 %v632_v39, %v632_v39 }
  0xbd   : > { %v1039_v5 = vunpack.c.l.b16 %v719_v14  ;;  %v690_v6 = vsel %vm672_vm4, %v620_v3, %v689_v18  ;;  %v1043_v7 = vunpack.c.l.b16 %v723_v40  ;;  %v1047_v8 = vunpack.c.l.b16 %v727_v12 }
  0xbe   : > { %v1051_v9 = vunpack.c.l.b16 %v731_v16  ;;  %v691_v10 = vsel %vm674_vm5, %v624_v11, %v690_v6  ;;  %v1055_v22 = vunpack.c.l.b16 %v735_v17  ;;  %v1059_v23 = vunpack.c.l.b16 %v739_v44 }
  0xbf   : > { %v1063_v50 = vunpack.c.l.b16 %v743_v19  ;;  %v692_v15 = vsel %vm676_vm6, %v628_v32, %v691_v10  ;;  %v1067_v20 = vunpack.c.l.b16 %v747_v45  ;;  %v1083_v21 = vsel %vm666_vm1, %v1043_v7, %v1039_v5 }
  0xc0   : > { %v396_v25 = vadd.f32 %v395_v33, %v394_v41  ;;  %v693_v26 = vsel %vm678_vm7, %v632_v39, %v692_v15  ;;  %v1084_v42 = vsel %vm668_vm2, %v1047_v8, %v1083_v21  ;;  %v424_v24 = vadd.f32 %v423_v62, %v422_v0  ;;  %v3071_v15 = vld [vmem:[%s4769_s29 + $0x60] sm:$0xf0] }
  0xc1   : > { %v451_v27 = vrot.slane %v450_v58, 2  ;;  %707 = vst [vmem:[%s4780_s23 + $0x10] sm:$0xff] %v693_v26  ;;  %v1085_v51 = vsel %vm670_vm3, %v1051_v9, %v1084_v42  ;;  %v479_v46 = vrot.slane %v478_v59, 2  ;;  %v507_v47 = vrot.slane %v506_v63, 2  ;;  %v4142_v42 = vld [vmem:[%s4769_s29 + $0x244] sm:$0xf] }
  0xc2   : > { %v397_v43 = vrot.slane %v396_v25, 1  ;;  %v1086_v48 = vsel %vm672_vm4, %v1055_v22, %v1085_v51  ;;  %v425_v53 = vrot.slane %v424_v24, 1  ;;  %v534_v29 = vadd.f32 %v533_v56, %v532_v31  ;;  %v307_v51 = vld [vmem:[%s4761_s8] sm:$0xff] }
  0xc3   : > { %v452_v28 = vadd.f32 %v451_v27, %v450_v58  ;;  %v1087_v34 = vsel %vm674_vm5, %v1059_v23, %v1086_v48  ;;  %v480_v54 = vadd.f32 %v479_v46, %v478_v59  ;;  %v508_v30 = vadd.f32 %v507_v47, %v506_v63  ;;  %v4206_v27 = vld [vmem:[%s4769_s29 + $0x444] sm:$0xf] }
  0xc4   : > { %v398_v57 = vadd.f32 %v397_v43, %v396_v25  ;;  %v1088_v36 = vsel %vm676_vm6, %v1063_v50, %v1087_v34  ;;  %v426_v41 = vadd.f32 %v425_v53, %v424_v24  ;;  %v535_v55 = vrot.slane %v534_v29, 2  ;;  %v4078_v50 = vld [vmem:[%s4769_s29 + $0x44] sm:$0xf] }
  0xc5   : > { %v453_v0 = vrot.slane %v452_v28, 1  ;;  %v1089_v33 = vsel %vm678_vm7, %v1067_v20, %v1088_v36  ;;  %v481_v62 = vrot.slane %v480_v54, 1  ;;  %v509_v37 = vrot.slane %v508_v30, 1  ;;  %v3327_v24 = vld [vmem:[%s4769_s29 + $0x260] sm:$0xf0] }
  0xc6   : > { %v562_v31 = vadd.f32 %v561_v60, %v5076_v49  ;;  %v5115_v58 = vpack.c.b16 %v1089_v33, %v1089_v33  ;;  %v536_v38 = vadd.f32 %v535_v55, %v534_v29  ;;  %v588_v1 = vadd.f32 %v370_v52, %v366_v35  ;;  %v311_v43 = vld [vmem:[%s4761_s8 + $0x20] sm:$0xff] }
  0xc7   : > { %v454_v56 = vadd.f32 %v453_v0, %v452_v28  ;;  %v482_v59 = vadd.f32 %v481_v62, %v480_v54  ;;  %v510_v63 = vadd.f32 %v509_v37, %v508_v30  ;;  %v605_v3 = vmul.f32 %v5083_v61, %v398_v57  ;;  %v3583_v28 = vld [vmem:[%s4769_s29 + $0x460] sm:$0xf0] }
  0xc8   : > { %v563_v2 = vrot.slane %v562_v31, 2  ;;  %2419 = vmatmul.bf16.vlgmr.msra.gmra.mxu2 %v5115_v58  ;;  %v537_v11 = vrot.slane %v536_v38, 1  ;;  %v589_v32 = vrot.slane %v588_v1, 4  ;;  %v609_v39 = vmul.f32 %v5083_v61, %v426_v41  ;;  %v4270_v29 = vld [vmem:[%s4769_s29 + $0x644] sm:$0xf] }
  0xc9   : > { %v613_v13 = vmul.f32 %v5083_v61, %v454_v56  ;;  %v617_v49 = vmul.f32 %v5083_v61, %v482_v59  ;;  %v621_v60 = vmul.f32 %v5083_v61, %v510_v63  ;;  %v720_v40 = vpack.c.bf16 %v605_v3, %v605_v3  ;;  %v3839_v34 = vld [vmem:[%s4769_s29 + $0x660] sm:$0xf0] }
  0xca   : > { %v564_v14 = vadd.f32 %v563_v2, %v562_v31  ;;  %v538_v12 = vadd.f32 %v537_v11, %v536_v38  ;;  %v590_v4 = vadd.f32 %v589_v32, %v588_v1  ;;  %v694_v16 = vsel %vm666_vm1, %v609_v39, %v605_v3  ;;  %v315_v30 = vld [vmem:[%s4761_s8 + $0x40] sm:$0xff] }
  0xcb   : > { %v724_v17 = vpack.c.bf16 %v609_v39, %v609_v39  ;;  %v695_v18 = vsel %vm668_vm2, %v613_v13, %v694_v16  ;;  %v728_v19 = vpack.c.bf16 %v613_v13, %v613_v13  ;;  %v732_v45 = vpack.c.bf16 %v617_v49, %v617_v49  ;;  %v319_v36 = vld [vmem:[%s4761_s8 + $0x60] sm:$0xff] }
  0xcc   : > { %v565_v44 = vrot.slane %v564_v14, 1  ;;  %v591_v5 = vrot.slane %v590_v4, 2  ;;  %v625_v6 = vmul.f32 %v5083_v61, %v538_v12  ;;  %v696_v7 = vsel %vm670_vm3, %v617_v49, %v695_v18  ;;  %v323_v41 = vld [vmem:[%s4761_s8 + $0x80] sm:$0xff] }
  0xcd   : > { %v736_v8 = vpack.c.bf16 %v621_v60, %v621_v60  ;;  %v697_v10 = vsel %vm672_vm4, %v621_v60, %v696_v7  ;;  %v1040_v22 = vunpack.c.l.b16 %v720_v40  ;;  %v1044_v23 = vunpack.c.l.b16 %v724_v17  ;;  %v327_v37 = vld [vmem:[%s4761_s8 + $0xa0] sm:$0xff] }
  0xce   : > { %v566_v9 = vadd.f32 %v565_v44, %v564_v14  ;;  %v592_v20 = vadd.f32 %v591_v5, %v590_v4  ;;  %v698_v21 = vsel %vm674_vm5, %v625_v6, %v697_v10  ;;  %v740_v25 = vpack.c.bf16 %v625_v6, %v625_v6  ;;  %v331_v31 = vld [vmem:[%s4761_s8 + $0xc0] sm:$0xff] }
  0xcf   : > { %v1048_v26 = vunpack.c.l.b16 %v728_v19  ;;  %v1052_v47 = vunpack.c.l.b16 %v732_v45  ;;  %v1056_v48 = vunpack.c.l.b16 %v736_v8  ;;  %v1090_v53 = vsel %vm666_vm1, %v1044_v23, %v1040_v22  ;;  %v335_v56 = vld [vmem:[%s4761_s8 + $0xe0] sm:$0xff] }
  0xd0   : > { %v629_v46 = vmul.f32 %v5083_v61, %v566_v9  ;;  %v593_v35 = vrot.slane %v592_v20, 1  ;;  %v1060_v52 = vunpack.c.l.b16 %v740_v25  ;;  %v3074_v54 = vor.u32 %v4078_v50, %v3071_v15  ;;  %v339_v2 = vld [vmem:[%s4761_s8 + $0x100] sm:$0xff] }
  0xd1   : > { %v1091_v57 = vsel %vm668_vm2, %v1048_v26, %v1090_v53  ;;  %v3330_v62 = vor.u32 %v4142_v42, %v3327_v24  ;;  %v3586_v59 = vor.u32 %v4206_v27, %v3583_v28  ;;  %v3842_v63 = vor.u32 %v4270_v29, %v3839_v34  ;;  %v343_v3 = vld [vmem:[%s4761_s8 + $0x120] sm:$0xff] }
  0xd2   : > { %v699_v0 = vsel %vm676_vm6, %v629_v46, %v698_v21  ;;  %v744_v55 = vpack.c.bf16 %v629_v46, %v629_v46  ;;  %v1092_v33 = vsel %vm670_vm3, %v1052_v47, %v1091_v57  ;;  %v594_v38 = vadd.f32 %v593_v35, %v592_v20  ;;  %2443 = vmatpush.bf16.msrb.mxu0 %v3074_v54  ;;  %v347_v49 = vld [vmem:[%s4761_s8 + $0x140] sm:$0xff] }
  0xd3   : > { %v1093_v1 = vsel %vm672_vm4, %v1056_v48, %v1092_v33  ;;  %2456 = vmatpush.bf16.msrb.mxu1 %v3330_v62  ;;  %v371_v39 = vadd.f32 %v311_v43, %v307_v51  ;;  %v399_v13 = vadd.f32 %v319_v36, %v315_v30  ;;  %2469 = vmatpush.bf16.msrb.mxu2 %v3586_v59  ;;  %v351_v60 = vld [vmem:[%s4761_s8 + $0x160] sm:$0xff] }
  0xd4   : > { %v1064_v11 = vunpack.c.l.b16 %v744_v55  ;;  %v1094_v32 = vsel %vm674_vm5, %v1060_v52, %v1093_v1  ;;  %v633_v14 = vmul.f32 %v5083_v61, %v594_v38  ;;  %2482 = vmatpush.bf16.msrb.mxu3 %v3842_v63  ;;  %v427_v40 = vadd.f32 %v327_v37, %v323_v41  ;;  %v355_v16 = vld [vmem:[%s4761_s8 + $0x180] sm:$0xff] }
  0xd5   : > { %v455_v12 = vadd.f32 %v335_v56, %v331_v31  ;;  %v359_v17 = vld [vmem:[%s4761_s8 + $0x1a0] sm:$0xff]  ;;  %v372_v44 = vrot.slane %v371_v39, 4  ;;  %v400_v18 = vrot.slane %v399_v13, 4  ;;  %v483_v19 = vadd.f32 %v343_v3, %v339_v2 }
  0xd6   : > { %v1095_v4 = vsel %vm676_vm6, %v1064_v11, %v1094_v32  ;;  %v700_v45 = vsel %vm678_vm7, %v633_v14, %v699_v0  ;;  %v748_v5 = vpack.c.bf16 %v633_v14, %v633_v14  ;;  %v428_v6 = vrot.slane %v427_v40, 4  ;;  %v363_v27 = vld [vmem:[%s4761_s8 + $0x1c0] sm:$0xff] }
  0xd7   : > { %v456_v7 = vrot.slane %v455_v12, 4  ;;  %708 = vst [vmem:[%s4780_s23 + $0x18] sm:$0xff] %v700_v45  ;;  %v373_v8 = vadd.f32 %v372_v44, %v371_v39  ;;  %v401_v9 = vadd.f32 %v400_v18, %v399_v13  ;;  %v484_v10 = vrot.slane %v483_v19, 4  ;;  %v367_v51 = vld [vmem:[%s4761_s8 + $0x1e0] sm:$0xff] }
  0xd8   : > { %v511_v22 = vadd.f32 %v351_v60, %v347_v49  ;;  %v1068_v23 = vunpack.c.l.b16 %v748_v5  ;;  %v429_v50 = vadd.f32 %v428_v6, %v427_v40  ;;  %v539_v20 = vadd.f32 %v359_v17, %v355_v16 }
  0xd9   : > { %v457_v15 = vadd.f32 %v456_v7, %v455_v12  ;;  %v374_v21 = vrot.slane %v373_v8, 2  ;;  %v402_v25 = vrot.slane %v401_v9, 2  ;;  %v485_v26 = vadd.f32 %v484_v10, %v483_v19 }
  0xda   : > { %v512_v42 = vrot.slane %v511_v22, 4  ;;  %v1096_v24 = vsel %vm678_vm7, %v1068_v23, %v1095_v4  ;;  %v430_v43 = vrot.slane %v429_v50, 2  ;;  %v540_v47 = vrot.slane %v539_v20, 4  ;;  %v308_v23 = vld [vmem:[%s4761_s8 + $0x8] sm:$0xff] }
  0xdb   : > { %v458_v46 = vrot.slane %v457_v15, 2  ;;  %v5165_v48 = vpack.c.b16 %v1096_v24, %v1096_v24  ;;  %v375_v53 = vadd.f32 %v374_v21, %v373_v8  ;;  %v403_v28 = vadd.f32 %v402_v25, %v401_v9  ;;  %v312_v25 = vld [vmem:[%s4761_s8 + $0x28] sm:$0xff] }
  0xdc   : > { %v486_v29 = vrot.slane %v485_v26, 2  ;;  %v431_v34 = vadd.f32 %v430_v43, %v429_v50  ;;  %v513_v52 = vadd.f32 %v512_v42, %v511_v22  ;;  %v541_v57 = vadd.f32 %v540_v47, %v539_v20  ;;  %v320_v42 = vld [vmem:[%s4761_s8 + $0x68] sm:$0xff] }
  0xdd   : > { %v459_v35 = vadd.f32 %v458_v46, %v457_v15  ;;  %2432 = vmatmul.bf16.vlgmr.msra.gmra.mxu3 %v5165_v48  ;;  %v376_v54 = vrot.slane %v375_v53, 1  ;;  %v404_v30 = vrot.slane %v403_v28, 1  ;;  %v567_v41 = vadd.f32 %v367_v51, %v363_v27  ;;  %v324_v46 = vld [vmem:[%s4761_s8 + $0x88] sm:$0xff] }
  0xde   : > { %v487_v36 = vadd.f32 %v486_v29, %v485_v26  ;;  %v432_v0 = vrot.slane %v431_v34, 1  ;;  %v514_v33 = vrot.slane %v513_v52, 2  ;;  %v542_v62 = vrot.slane %v541_v57, 2  ;;  %v316_v26 = vld [vmem:[%s4761_s8 + $0x48] sm:$0xff] }
  0xdf   : > { %v460_v55 = vrot.slane %v459_v35, 1  ;;  %v377_v37 = vadd.f32 %v376_v54, %v375_v53  ;;  %v405_v31 = vadd.f32 %v404_v30, %v403_v28  ;;  %v568_v38 = vrot.slane %v567_v41, 4  ;;  %v328_v47 = vld [vmem:[%s4761_s8 + $0xa8] sm:$0xff] }
  0xe0   : > { %v488_v56 = vrot.slane %v487_v36, 1  ;;  %v433_v1 = vadd.f32 %v432_v0, %v431_v34  ;;  %v515_v63 = vadd.f32 %v514_v33, %v513_v52  ;;  %v543_v2 = vadd.f32 %v542_v62, %v541_v57  ;;  %v332_v53 = vld [vmem:[%s4761_s8 + $0xc8] sm:$0xff] }
  0xe1   : > { %v461_v59 = vadd.f32 %v460_v55, %v459_v35  ;;  %v569_v11 = vadd.f32 %v568_v38, %v567_v41  ;;  %v602_v32 = vmul.f32 %v5083_v61, %v377_v37  ;;  %v606_v39 = vmul.f32 %v5083_v61, %v405_v31  ;;  %v336_v52 = vld [vmem:[%s4761_s8 + $0xe8] sm:$0xff] }
  0xe2   : > { %v489_v3 = vadd.f32 %v488_v56, %v487_v36  ;;  %v516_v13 = vrot.slane %v515_v63, 1  ;;  %v544_v14 = vrot.slane %v543_v2, 1  ;;  %v610_v49 = vmul.f32 %v5083_v61, %v433_v1  ;;  %v340_v57 = vld [vmem:[%s4761_s8 + $0x108] sm:$0xff] }
  0xe3   : > { %v614_v60 = vmul.f32 %v5083_v61, %v461_v59  ;;  %v570_v40 = vrot.slane %v569_v11, 2  ;;  %v667_v4 = vsel %vm666_vm1, %v606_v39, %v602_v32  ;;  %v717_v16 = vpack.c.bf16 %v602_v32, %v602_v32  ;;  %v344_v54 = vld [vmem:[%s4761_s8 + $0x128] sm:$0xff] }
  0xe4   : > { %v618_v12 = vmul.f32 %v5083_v61, %v489_v3  ;;  %v517_v17 = vadd.f32 %v516_v13, %v515_v63  ;;  %v545_v44 = vadd.f32 %v544_v14, %v543_v2  ;;  %v669_v18 = vsel %vm668_vm2, %v610_v49, %v667_v4  ;;  %v348_v56 = vld [vmem:[%s4761_s8 + $0x148] sm:$0xff] }
  0xe5   : > { %v721_v19 = vpack.c.bf16 %v606_v39, %v606_v39  ;;  %v571_v45 = vadd.f32 %v570_v40, %v569_v11  ;;  %v671_v5 = vsel %vm670_vm3, %v614_v60, %v669_v18  ;;  %v725_v6 = vpack.c.bf16 %v610_v49, %v610_v49  ;;  %v352_v38 = vld [vmem:[%s4761_s8 + $0x168] sm:$0xff] }
  0xe6   : > { %v729_v7 = vpack.c.bf16 %v614_v60, %v614_v60  ;;  %v622_v8 = vmul.f32 %v5083_v61, %v517_v17  ;;  %v626_v9 = vmul.f32 %v5083_v61, %v545_v44  ;;  %v673_v10 = vsel %vm672_vm4, %v618_v12, %v671_v5  ;;  %v356_v32 = vld [vmem:[%s4761_s8 + $0x188] sm:$0xff] }
  0xe7   : > { %v733_v22 = vpack.c.bf16 %v618_v12, %v618_v12  ;;  %v572_v50 = vrot.slane %v571_v45, 1  ;;  %v1037_v15 = vunpack.c.l.b16 %v717_v16  ;;  %v1041_v20 = vunpack.c.l.b16 %v721_v19  ;;  %v360_v39 = vld [vmem:[%s4761_s8 + $0x1a8] sm:$0xff] }
  0xe8   : > { %v1045_v21 = vunpack.c.l.b16 %v725_v6  ;;  %v675_v24 = vsel %vm674_vm5, %v622_v8, %v673_v10  ;;  %v737_v27 = vpack.c.bf16 %v622_v8, %v622_v8  ;;  %v741_v51 = vpack.c.bf16 %v626_v9, %v626_v9  ;;  %v364_v6 = vld [vmem:[%s4761_s8 + $0x1c8] sm:$0xff] }
  0xe9   : > { %v1049_v43 = vunpack.c.l.b16 %v729_v7  ;;  %v573_v28 = vadd.f32 %v572_v50, %v571_v45  ;;  %v677_v29 = vsel %vm676_vm6, %v626_v9, %v675_v24  ;;  %v1053_v34 = vunpack.c.l.b16 %v733_v22  ;;  %v368_v7 = vld [vmem:[%s4761_s8 + $0x1e8] sm:$0xff] }
  0xea   : > { %v1069_v35 = vsel %vm666_vm1, %v1041_v20, %v1037_v15  ;;  %v1057_v30 = vunpack.c.l.b16 %v737_v27  ;;  %v1061_v36 = vunpack.c.l.b16 %v741_v51  ;;  %v378_v0 = vadd.f32 %v312_v25, %v308_v23 }
  0xeb   : > { %v1070_v41 = vsel %vm668_vm2, %v1045_v21, %v1069_v35  ;;  %v630_v55 = vmul.f32 %v5083_v61, %v573_v28  ;;  %v406_v62 = vadd.f32 %v320_v42, %v316_v26  ;;  %v434_v37 = vadd.f32 %v328_v47, %v324_v46 }
  0xec   : > { %v1071_v33 = vsel %vm670_vm3, %v1049_v43, %v1070_v41  ;;  %v379_v1 = vrot.slane %v378_v0, 4  ;;  %v462_v59 = vadd.f32 %v336_v52, %v332_v53  ;;  %v490_v63 = vadd.f32 %v344_v54, %v340_v57 }
  0xed   : > { %v1072_v31 = vsel %vm672_vm4, %v1053_v34, %v1071_v33  ;;  %v679_v2 = vsel %vm678_vm7, %v630_v55, %v677_v29  ;;  %v745_v3 = vpack.c.bf16 %v630_v55, %v630_v55  ;;  %v407_v13 = vrot.slane %v406_v62, 4 }
  0xee   : > { %v1073_v11 = vsel %vm674_vm5, %v1057_v30, %v1072_v31  ;;  %705 = vst [vmem:[%s4780_s23] sm:$0xff] %v679_v2  ;;  %v380_v49 = vadd.f32 %v379_v1, %v378_v0  ;;  %v435_v60 = vrot.slane %v434_v37, 4  ;;  %v463_v40 = vrot.slane %v462_v59, 4 }
  0xef   : > { %v1074_v14 = vsel %vm676_vm6, %v1061_v36, %v1073_v11  ;;  %v1065_v12 = vunpack.c.l.b16 %v745_v3  ;;  %v408_v4 = vadd.f32 %v407_v13, %v406_v62  ;;  %v491_v16 = vrot.slane %v490_v63, 4 }
  0xf0   : > { %v518_v17 = vadd.f32 %v352_v38, %v348_v56  ;;  %v381_v44 = vrot.slane %v380_v49, 2  ;;  %v436_v18 = vadd.f32 %v435_v60, %v434_v37  ;;  %v464_v19 = vadd.f32 %v463_v40, %v462_v59 }
  0xf1   : > { %v546_v45 = vadd.f32 %v360_v39, %v356_v32  ;;  %v1075_v5 = vsel %vm678_vm7, %v1065_v12, %v1074_v14  ;;  %v409_v8 = vrot.slane %v408_v4, 2  ;;  %v492_v9 = vadd.f32 %v491_v16, %v490_v63 }
  0xf2   : > { %v519_v10 = vrot.slane %v518_v17, 4  ;;  %v5207_v22 = vpack.c.b16 %v1075_v5, %v1075_v5  ;;  %v382_v23 = vadd.f32 %v381_v44, %v380_v49  ;;  %v437_v50 = vrot.slane %v436_v18, 2 }
  0xf3   : > { %v465_v15 = vrot.slane %v464_v19, 2  ;;  %v410_v20 = vadd.f32 %v409_v8, %v408_v4  ;;  %v493_v21 = vrot.slane %v492_v9, 2  ;;  %v547_v26 = vrot.slane %v546_v45, 4  ;;  %v4134_v8 = vld [vmem:[%s4769_s29 + $0x204] sm:$0xf] }
  0xf4   : > { %v520_v25 = vadd.f32 %v519_v10, %v518_v17  ;;  %2393 = vmatmul.bf16.vlgmr.msra.gmra.mxu0 %v5207_v22  ;;  %v383_v42 = vrot.slane %v382_v23, 1  ;;  %v438_v24 = vadd.f32 %v437_v50, %v436_v18  ;;  %v574_v51 = vadd.f32 %v368_v7, %v364_v6  ;;  %v4070_v18 = vld [vmem:[%s4769_s29 + $0x4] sm:$0xf] }
  0xf5   : > { %v466_v27 = vadd.f32 %v465_v15, %v464_v19  ;;  %v411_v43 = vrot.slane %v410_v20, 1  ;;  %v494_v46 = vadd.f32 %v493_v21, %v492_v9  ;;  %v548_v53 = vadd.f32 %v547_v26, %v546_v45  ;;  %v3039_v19 = vld [vmem:[%s4769_s29 + $0x20] sm:$0xf0] }
  0xf6   : > { %v521_v47 = vrot.slane %v520_v25, 2  ;;  %v384_v28 = vadd.f32 %v383_v42, %v382_v23  ;;  %v439_v29 = vrot.slane %v438_v24, 1  ;;  %v575_v35 = vrot.slane %v574_v51, 4  ;;  %v3295_v9 = vld [vmem:[%s4769_s29 + $0x220] sm:$0xf0] }
  0xf7   : > { %v467_v34 = vrot.slane %v466_v27, 1  ;;  %v412_v52 = vadd.f32 %v411_v43, %v410_v20  ;;  %v495_v57 = vrot.slane %v494_v46, 1  ;;  %v549_v30 = vrot.slane %v548_v53, 2  ;;  %v4198_v10 = vld [vmem:[%s4769_s29 + $0x404] sm:$0xf] }
  0xf8   : > { %v522_v54 = vadd.f32 %v521_v47, %v520_v25  ;;  %v440_v36 = vadd.f32 %v439_v29, %v438_v24  ;;  %v576_v0 = vadd.f32 %v575_v35, %v574_v51  ;;  %v603_v55 = vmul.f32 %v5083_v61, %v384_v28  ;;  %v3551_v21 = vld [vmem:[%s4769_s29 + $0x420] sm:$0xf0]  ;;  %v3269_v28 = vld [vmem:[%s4769_s29 + $0x1c8] sm:$0xf] }
  0xf9   : > { %v468_v41 = vadd.f32 %v467_v34, %v466_v27  ;;  %v496_v33 = vadd.f32 %v495_v57, %v494_v46  ;;  %v550_v37 = vadd.f32 %v549_v30, %v548_v53  ;;  %v607_v31 = vmul.f32 %v5083_v61, %v412_v52  ;;  %v4262_v25 = vld [vmem:[%s4769_s29 + $0x604] sm:$0xf]  ;;  %v4131_v29 = vld [vmem:[%s4769_s29 + $0x1e4] sm:$0xf0] }
  0xfa   : > { %v523_v62 = vrot.slane %v522_v54, 1  ;;  %v577_v56 = vrot.slane %v576_v0, 2  ;;  %v611_v38 = vmul.f32 %v5083_v61, %v440_v36  ;;  %v718_v59 = vpack.c.bf16 %v603_v55, %v603_v55  ;;  %v3807_v26 = vld [vmem:[%s4769_s29 + $0x620] sm:$0xf0]  ;;  %v3781_v34 = vld [vmem:[%s4769_s29 + $0x5c8] sm:$0xf] }
  0xfb   : > { %v615_v1 = vmul.f32 %v5083_v61, %v468_v41  ;;  %v551_v2 = vrot.slane %v550_v37, 1  ;;  %v619_v3 = vmul.f32 %v5083_v61, %v496_v33  ;;  %v680_v11 = vsel %vm666_vm1, %v607_v31, %v603_v55  ;;  %v3525_v30 = vld [vmem:[%s4769_s29 + $0x3c8] sm:$0xf] }
  0xfc   : > { %v524_v63 = vadd.f32 %v523_v62, %v522_v54  ;;  %v578_v32 = vadd.f32 %v577_v56, %v576_v0  ;;  %v681_v39 = vsel %vm668_vm2, %v611_v38, %v680_v11  ;;  %v722_v13 = vpack.c.bf16 %v607_v31, %v607_v31  ;;  %v4259_v36 = vld [vmem:[%s4769_s29 + $0x5e4] sm:$0xf0] }
  0xfd   : > { %v726_v14 = vpack.c.bf16 %v611_v38, %v611_v38  ;;  %v552_v49 = vadd.f32 %v551_v2, %v550_v37  ;;  %v682_v40 = vsel %vm670_vm3, %v615_v1, %v681_v39  ;;  %v730_v12 = vpack.c.bf16 %v615_v1, %v615_v1  ;;  %v4323_v41 = vld [vmem:[%s4769_s29 + $0x7e4] sm:$0xf0] }
  0xfe   : > { %v623_v60 = vmul.f32 %v5083_v61, %v524_v63  ;;  %v579_v4 = vrot.slane %v578_v32, 1  ;;  %v683_v16 = vsel %vm672_vm4, %v619_v3, %v682_v40  ;;  %v734_v17 = vpack.c.bf16 %v619_v3, %v619_v3  ;;  %v4195_v62 = vld [vmem:[%s4769_s29 + $0x3e4] sm:$0xf0] }
  0xff   : > { %v1038_v44 = vunpack.c.l.b16 %v718_v59  ;;  %v627_v45 = vmul.f32 %v5083_v61, %v552_v49  ;;  %v1042_v7 = vunpack.c.l.b16 %v722_v13  ;;  %v1046_v50 = vunpack.c.l.b16 %v726_v14  ;;  %v3237_v37 = vld [vmem:[%s4769_s29 + $0x188] sm:$0xf] }
 0x100   : > { %v684_v5 = vsel %vm674_vm5, %v623_v60, %v683_v16  ;;  %v738_v6 = vpack.c.bf16 %v623_v60, %v623_v60  ;;  %v580_v23 = vadd.f32 %v579_v4, %v578_v32  ;;  %v1050_v15 = vunpack.c.l.b16 %v730_v12  ;;  %v4123_v31 = vld [vmem:[%s4769_s29 + $0x1a4] sm:$0xf0] }
 0x101   : > { %v1054_v20 = vunpack.c.l.b16 %v734_v17  ;;  %v685_v42 = vsel %vm676_vm6, %v627_v45, %v684_v5  ;;  %v742_v24 = vpack.c.bf16 %v627_v45, %v627_v45  ;;  %v1076_v51 = vsel %vm666_vm1, %v1042_v7, %v1038_v44  ;;  %v3749_v1 = vld [vmem:[%s4769_s29 + $0x588] sm:$0xf] }
 0x102   : > { %v1058_v27 = vunpack.c.l.b16 %v738_v6  ;;  %v631_v43 = vmul.f32 %v5083_v61, %v580_v23  ;;  %v1077_v46 = vsel %vm668_vm2, %v1046_v50, %v1076_v51  ;;  %v3042_v47 = vor.u32 %v4070_v18, %v3039_v19  ;;  %v4037_v61 = vld [vmem:[%s4769_s29 + $0x7c8] sm:$0xf] }
 0x103   : > { %v3298_v53 = vor.u32 %v4134_v8, %v3295_v9  ;;  %v1062_v35 = vunpack.c.l.b16 %v742_v24  ;;  %v1078_v52 = vsel %vm670_vm3, %v1050_v15, %v1077_v46  ;;  %v3554_v57 = vor.u32 %v4198_v10, %v3551_v21  ;;  %v4251_v59 = vld [vmem:[%s4769_s29 + $0x5a4] sm:$0xf0] }
 0x104   : > { %v3810_v54 = vor.u32 %v4262_v25, %v3807_v26  ;;  %v686_v0 = vsel %vm678_vm7, %v631_v43, %v685_v42  ;;  %v746_v55 = vpack.c.bf16 %v631_v43, %v631_v43  ;;  %v1079_v33 = vsel %vm672_vm4, %v1054_v20, %v1078_v52  ;;  %2444 = vmatpush.bf16.msrb.mxu0 %v3042_v47  ;;  %v4005_v32 = vld [vmem:[%s4769_s29 + $0x788] sm:$0xf] }
 0x105   : > { %2457 = vmatpush.bf16.msrb.mxu1 %v3298_v53  ;;  %706 = vst [vmem:[%s4780_s23 + $0x8] sm:$0xff] %v686_v0  ;;  %v1080_v56 = vsel %vm674_vm5, %v1058_v27, %v1079_v33  ;;  %2470 = vmatpush.bf16.msrb.mxu2 %v3554_v57  ;;  %v3270_v38 = vor.u32 %v4131_v29, %v3269_v28  ;;  %v4315_v39 = vld [vmem:[%s4769_s29 + $0x7a4] sm:$0xf0] }
 0x106   : > { %2483 = vmatpush.bf16.msrb.mxu3 %v3810_v54  ;;  %v1066_v63 = vunpack.c.l.b16 %v746_v55  ;;  %v1081_v2 = vsel %vm676_vm6, %v1062_v35, %v1080_v56  ;;  %v3782_v3 = vor.u32 %v4259_v36, %v3781_v34  ;;  %v4038_v11 = vor.u32 %v4323_v41, %v4037_v61  ;;  %v3493_v60 = vld [vmem:[%s4769_s29 + $0x388] sm:$0xf] }
 0x107   : > { %v3238_v13 = vor.u32 %v4123_v31, %v3237_v37  ;;  %v3526_v49 = vor.u32 %v4195_v62, %v3525_v30  ;;  %v3750_v40 = vor.u32 %v4251_v59, %v3749_v1  ;;  %v3205_v12 = vld [vmem:[%s4769_s29 + $0x148] sm:$0xf]  ;;  %v4006_v44 = vor.u32 %v4315_v39, %v4005_v32  ;;  %2445 = vmatmul.bf16.vlgmr.msrb.gmra.mxu0 %v5207_v22 }
 0x108   : > { %2489 = vmatpush.bf16.msra.mxu0 %v3270_v38  ;;  %v1082_v14 = vsel %vm678_vm7, %v1066_v63, %v1081_v2  ;;  %v4115_v4 = vld [vmem:[%s4769_s29 + $0x164] sm:$0xf0]  ;;  %2471 = vmatmul.bf16.vlgmr.msrb.gmra.mxu2 %v5115_v58 }
 0x109   : > { %2515 = vmatpush.bf16.msra.mxu2 %v3782_v3  ;;  %v5258_v16 = vpack.c.b16 %v1082_v14, %v1082_v14  ;;  %v4187_v17 = vld [vmem:[%s4769_s29 + $0x3a4] sm:$0xf0]  ;;  %2484 = vmatmul.bf16.vlgmr.msrb.gmra.mxu3 %v5165_v48  ;;  %v3206_v6 = vor.u32 %v4115_v4, %v3205_v12 }
 0x10a   : > { %2528 = vmatpush.bf16.msra.mxu3 %v4038_v11  ;;  %v3717_v18 = vld [vmem:[%s4769_s29 + $0x548] sm:$0xf]  ;;  %v3494_v7 = vor.u32 %v4187_v17, %v3493_v60 }
 0x10b   : > { %v4243_v19 = vld [vmem:[%s4769_s29 + $0x564] sm:$0xf0]  ;;  %2406 = vmatmul.bf16.vlgmr.msra.gmra.mxu1 %v5258_v16 }
 0x10c   : > { %v3973_v45 = vld [vmem:[%s4769_s29 + $0x748] sm:$0xf]  ;;  %2490 = vmatpush.bf16.msra.mxu0 %v3238_v13  ;;  %2502 = vmatpush.bf16.msra.mxu1 %v3526_v49  ;;  %v3718_v9 = vor.u32 %v4243_v19, %v3717_v18 }
 0x10d   : > { %v4307_v5 = vld [vmem:[%s4769_s29 + $0x764] sm:$0xf0]  ;;  %2516 = vmatpush.bf16.msra.mxu2 %v3750_v40 }
 0x10e   : > { %v3461_v8 = vld [vmem:[%s4769_s29 + $0x348] sm:$0xf]  ;;  %2529 = vmatpush.bf16.msra.mxu3 %v4006_v44  ;;  %v3974_v15 = vor.u32 %v4307_v5, %v3973_v45 }
 0x10f   : > { %v3173_v10 = vld [vmem:[%s4769_s29 + $0x108] sm:$0xf] }
 0x110   : > { %v4107_v23 = vld [vmem:[%s4769_s29 + $0x124] sm:$0xf0]  ;;  %2491 = vmatpush.bf16.msra.mxu0 %v3206_v6  ;;  %2503 = vmatpush.bf16.msra.mxu1 %v3494_v7  ;;  %v4127_v6 = vld [vmem:[%s4769_s29 + $0x1cc] sm:$0xf] }
 0x111   : > { %v4179_v50 = vld [vmem:[%s4769_s29 + $0x364] sm:$0xf0]  ;;  %v3174_v42 = vor.u32 %v4107_v23, %v3173_v10  ;;  %2517 = vmatpush.bf16.msra.mxu2 %v3718_v9  ;;  %v3271_v7 = vld [vmem:[%s4769_s29 + $0x1e8] sm:$0xf0] }
 0x112   : > { %v3685_v20 = vld [vmem:[%s4769_s29 + $0x508] sm:$0xf]  ;;  %v3462_v24 = vor.u32 %v4179_v50, %v3461_v8  ;;  %2530 = vmatpush.bf16.msra.mxu3 %v3974_v15  ;;  %v4255_v8 = vld [vmem:[%s4769_s29 + $0x5cc] sm:$0xf] }
 0x113   : > { %v4235_v21 = vld [vmem:[%s4769_s29 + $0x524] sm:$0xf0]  ;;  %v3783_v10 = vld [vmem:[%s4769_s29 + $0x5e8] sm:$0xf0] }
 0x114   : > { %v3941_v25 = vld [vmem:[%s4769_s29 + $0x708] sm:$0xf]  ;;  %v3686_v51 = vor.u32 %v4235_v21, %v3685_v20  ;;  %2492 = vmatpush.bf16.msra.mxu0 %v3174_v42  ;;  %2504 = vmatpush.bf16.msra.mxu1 %v3462_v24  ;;  %v4319_v23 = vld [vmem:[%s4769_s29 + $0x7cc] sm:$0xf]  ;;  %v3274_v42 = vor.u32 %v4127_v6, %v3271_v7 }
 0x115   : > { %v4299_v26 = vld [vmem:[%s4769_s29 + $0x724] sm:$0xf0]  ;;  %v4039_v50 = vld [vmem:[%s4769_s29 + $0x7e8] sm:$0xf0] }
 0x116   : > { %v3429_v27 = vld [vmem:[%s4769_s29 + $0x308] sm:$0xf]  ;;  %v3942_v53 = vor.u32 %v4299_v26, %v3941_v25  ;;  %2518 = vmatpush.bf16.msra.mxu2 %v3686_v51  ;;  %v4191_v24 = vld [vmem:[%s4769_s29 + $0x3cc] sm:$0xf]  ;;  %v3786_v51 = vor.u32 %v4255_v8, %v3783_v10 }
 0x117   : > { %v3141_v43 = vld [vmem:[%s4769_s29 + $0xc8] sm:$0xf]  ;;  %v4159_v8 = vld [vmem:[%s4769_s29 + $0x2cc] sm:$0xf] }
 0x118   : > { %v4099_v46 = vld [vmem:[%s4769_s29 + $0xe4] sm:$0xf0]  ;;  %2531 = vmatpush.bf16.msra.mxu3 %v3942_v53  ;;  %v4247_v53 = vld [vmem:[%s4769_s29 + $0x58c] sm:$0xf] }
 0x119   : > { %v4171_v47 = vld [vmem:[%s4769_s29 + $0x324] sm:$0xf0]  ;;  %v3142_v52 = vor.u32 %v4099_v46, %v3141_v43  ;;  %v4042_v43 = vor.u32 %v4319_v23, %v4039_v50  ;;  %v4119_v46 = vld [vmem:[%s4769_s29 + $0x18c] sm:$0xf] }
 0x11a   : > { %v3653_v28 = vld [vmem:[%s4769_s29 + $0x4c8] sm:$0xf]  ;;  %v3430_v57 = vor.u32 %v4171_v47, %v3429_v27  ;;  %v3527_v27 = vld [vmem:[%s4769_s29 + $0x3e8] sm:$0xf0] }
 0x11b   : > { %v4227_v29 = vld [vmem:[%s4769_s29 + $0x4e4] sm:$0xf0]  ;;  %2493 = vmatpush.bf16.msra.mxu0 %v3142_v52  ;;  %2458 = vmatmul.bf16.vlgmr.msrb.gmra.mxu1 %v5258_v16  ;;  %v3239_v47 = vld [vmem:[%s4769_s29 + $0x1a8] sm:$0xf0]  ;;  %v3530_v52 = vor.u32 %v4191_v24, %v3527_v27 }
 0x11c   : > { %v3909_v34 = vld [vmem:[%s4769_s29 + $0x6c8] sm:$0xf]  ;;  %v3654_v30 = vor.u32 %v4227_v29, %v3653_v28  ;;  %2505 = vmatpush.bf16.msra.mxu1 %v3430_v57  ;;  %v3751_v28 = vld [vmem:[%s4769_s29 + $0x5a8] sm:$0xf0]  ;;  %v3242_v57 = vor.u32 %v4119_v46, %v3239_v47 }
 0x11d   : > { %v4291_v35 = vld [vmem:[%s4769_s29 + $0x6e4] sm:$0xf0]  ;;  %v4311_v29 = vld [vmem:[%s4769_s29 + $0x78c] sm:$0xf] }
 0x11e   : > { %v3397_v54 = vld [vmem:[%s4769_s29 + $0x2c8] sm:$0xf]  ;;  %v3910_v0 = vor.u32 %v4291_v35, %v3909_v34  ;;  %2519 = vmatpush.bf16.msra.mxu2 %v3654_v30  ;;  %v4007_v34 = vld [vmem:[%s4769_s29 + $0x7a8] sm:$0xf0] }
 0x11f   : > { %v3109_v36 = vld [vmem:[%s4769_s29 + $0x88] sm:$0xf]  ;;  %v3495_v30 = vld [vmem:[%s4769_s29 + $0x3a8] sm:$0xf0] }
 0x120   : > { %v4091_v61 = vld [vmem:[%s4769_s29 + $0xa4] sm:$0xf0]  ;;  %2532 = vmatpush.bf16.msra.mxu3 %v3910_v0  ;;  %v3207_v0 = vld [vmem:[%s4769_s29 + $0x168] sm:$0xf0] }
 0x121   : > { %v4163_v41 = vld [vmem:[%s4769_s29 + $0x2e4] sm:$0xf0]  ;;  %v3110_v31 = vor.u32 %v4091_v61, %v3109_v36  ;;  %v3754_v36 = vor.u32 %v4247_v53, %v3751_v28  ;;  %v4010_v61 = vor.u32 %v4311_v29, %v4007_v34  ;;  %v4087_v50 = vld [vmem:[%s4769_s29 + $0x8c] sm:$0xf] }
 0x122   : > { %v3621_v55 = vld [vmem:[%s4769_s29 + $0x488] sm:$0xf]  ;;  %v3398_v56 = vor.u32 %v4163_v41, %v3397_v54  ;;  %v4183_v54 = vld [vmem:[%s4769_s29 + $0x38c] sm:$0xf] }
 0x123   : > { %v4219_v33 = vld [vmem:[%s4769_s29 + $0x4a4] sm:$0xf0]  ;;  %2494 = vmatpush.bf16.msra.mxu0 %v3110_v31  ;;  %v4111_v41 = vld [vmem:[%s4769_s29 + $0x14c] sm:$0xf]  ;;  %v3498_v31 = vor.u32 %v4183_v54, %v3495_v30 }
 0x124   : > { %v3877_v62 = vld [vmem:[%s4769_s29 + $0x688] sm:$0xf]  ;;  %v3622_v1 = vor.u32 %v4219_v33, %v3621_v55  ;;  %2506 = vmatpush.bf16.msra.mxu1 %v3398_v56  ;;  %v4239_v55 = vld [vmem:[%s4769_s29 + $0x54c] sm:$0xf]  ;;  %v3210_v56 = vor.u32 %v4111_v41, %v3207_v0 }
 0x125   : > { %v4283_v37 = vld [vmem:[%s4769_s29 + $0x6a4] sm:$0xf0]  ;;  %v3719_v33 = vld [vmem:[%s4769_s29 + $0x568] sm:$0xf0] }
 0x126   : > { %v3365_v38 = vld [vmem:[%s4769_s29 + $0x288] sm:$0xf]  ;;  %v3878_v3 = vor.u32 %v4283_v37, %v3877_v62  ;;  %2520 = vmatpush.bf16.msra.mxu2 %v3622_v1  ;;  %v4303_v62 = vld [vmem:[%s4769_s29 + $0x74c] sm:$0xf] }
 0x127   : > { %v3077_v59 = vld [vmem:[%s4769_s29 + $0x48] sm:$0xf]  ;;  %v3975_v37 = vld [vmem:[%s4769_s29 + $0x768] sm:$0xf0] }
 0x128   : > { %v4083_v63 = vld [vmem:[%s4769_s29 + $0x64] sm:$0xf0]  ;;  %2533 = vmatpush.bf16.msra.mxu3 %v3878_v3  ;;  %v3463_v1 = vld [vmem:[%s4769_s29 + $0x368] sm:$0xf0] }
 0x129   : > { %v4155_v2 = vld [vmem:[%s4769_s29 + $0x2a4] sm:$0xf0]  ;;  %v3078_v14 = vor.u32 %v4083_v63, %v3077_v59  ;;  %v3722_v59 = vor.u32 %v4239_v55, %v3719_v33  ;;  %v3978_v63 = vor.u32 %v4303_v62, %v3975_v37  ;;  %v3175_v3 = vld [vmem:[%s4769_s29 + $0x128] sm:$0xf0] }
 0x12a   : > { %v3589_v11 = vld [vmem:[%s4769_s29 + $0x448] sm:$0xf]  ;;  %v3366_v40 = vor.u32 %v4155_v2, %v3365_v38  ;;  %v4175_v38 = vld [vmem:[%s4769_s29 + $0x34c] sm:$0xf] }
 0x12b   : > { %v4211_v32 = vld [vmem:[%s4769_s29 + $0x464] sm:$0xf0]  ;;  %2495 = vmatpush.bf16.msra.mxu0 %v3078_v14  ;;  %v4103_v2 = vld [vmem:[%s4769_s29 + $0x10c] sm:$0xf]  ;;  %v3466_v14 = vor.u32 %v4175_v38, %v3463_v1  ;;  %v3789_v38 = vld [vmem:[%s4769_s29 + $0x5d0] sm:$0xf] }
 0x12c   : > { %v3845_v39 = vld [vmem:[%s4769_s29 + $0x648] sm:$0xf]  ;;  %v3590_v12 = vor.u32 %v4211_v32, %v3589_v11  ;;  %2507 = vmatpush.bf16.msra.mxu1 %v3366_v40  ;;  %v4231_v11 = vld [vmem:[%s4769_s29 + $0x50c] sm:$0xf]  ;;  %v4260_v1 = vld [vmem:[%s4769_s29 + $0x5ec] sm:$0xf0] }
 0x12d   : > { %v4275_v13 = vld [vmem:[%s4769_s29 + $0x664] sm:$0xf0]  ;;  %v3687_v32 = vld [vmem:[%s4769_s29 + $0x528] sm:$0xf0] }
 0x12e   : > { %v3333_v49 = vld [vmem:[%s4769_s29 + $0x248] sm:$0xf]  ;;  %v3846_v18 = vor.u32 %v4275_v13, %v3845_v39  ;;  %2521 = vmatpush.bf16.msra.mxu2 %v3590_v12  ;;  %v4295_v39 = vld [vmem:[%s4769_s29 + $0x70c] sm:$0xf]  ;;  %v3690_v12 = vor.u32 %v4231_v11, %v3687_v32 }
 0x12f   : > { %v4147_v60 = vld [vmem:[%s4769_s29 + $0x264] sm:$0xf0]  ;;  %v3943_v13 = vld [vmem:[%s4769_s29 + $0x728] sm:$0xf0] }
 0x130   : > { %v3045_v4 = vld [vmem:[%s4769_s29 + $0x8] sm:$0xf]  ;;  %v3334_v15 = vor.u32 %v4147_v60, %v3333_v49  ;;  %2534 = vmatpush.bf16.msra.mxu3 %v3846_v18  ;;  %v3178_v49 = vor.u32 %v4103_v2, %v3175_v3  ;;  %v4167_v60 = vld [vmem:[%s4769_s29 + $0x30c] sm:$0xf]  ;;  %v4045_v2 = vld [vmem:[%s4769_s29 + $0x7d0] sm:$0xf] }
 0x131   : > { %v4075_v17 = vld [vmem:[%s4769_s29 + $0x24] sm:$0xf0]  ;;  %v3431_v40 = vld [vmem:[%s4769_s29 + $0x328] sm:$0xf0]  ;;  %v4324_v3 = vld [vmem:[%s4769_s29 + $0x7ec] sm:$0xf0] }
 0x132   : > { %v3557_v44 = vld [vmem:[%s4769_s29 + $0x408] sm:$0xf]  ;;  %v3046_v9 = vor.u32 %v4075_v17, %v3045_v4  ;;  %2508 = vmatpush.bf16.msra.mxu1 %v3334_v15  ;;  %v3946_v4 = vor.u32 %v4295_v39, %v3943_v13  ;;  %v4095_v17 = vld [vmem:[%s4769_s29 + $0xcc] sm:$0xf]  ;;  %v3434_v6 = vor.u32 %v4167_v60, %v3431_v40  ;;  %v4196_v60 = vld [vmem:[%s4769_s29 + $0x3ec] sm:$0xf0]  ;;  %v3790_v40 = vor.u32 %v4260_v1, %v3789_v38 }
 0x133   : > { %v4203_v19 = vld [vmem:[%s4769_s29 + $0x424] sm:$0xf0]  ;;  %v4223_v18 = vld [vmem:[%s4769_s29 + $0x4cc] sm:$0xf]  ;;  %v3405_v38 = vld [vmem:[%s4769_s29 + $0x2d0] sm:$0xf] }
 0x134   : > { %v3813_v45 = vld [vmem:[%s4769_s29 + $0x608] sm:$0xf]  ;;  %v3558_v21 = vor.u32 %v4203_v19, %v3557_v44  ;;  %2496 = vmatpush.bf16.msra.mxu0 %v3046_v9  ;;  %v3143_v44 = vld [vmem:[%s4769_s29 + $0xe8] sm:$0xf0]  ;;  %v4164_v1 = vld [vmem:[%s4769_s29 + $0x2ec] sm:$0xf0] }
 0x135   : > { %v4267_v5 = vld [vmem:[%s4769_s29 + $0x624] sm:$0xf0]  ;;  %v3655_v19 = vld [vmem:[%s4769_s29 + $0x4e8] sm:$0xf0]  ;;  %v3146_v7 = vor.u32 %v4095_v17, %v3143_v44  ;;  %v4124_v17 = vld [vmem:[%s4769_s29 + $0x1ac] sm:$0xf0] }
 0x136   : > { %v3301_v20 = vld [vmem:[%s4769_s29 + $0x208] sm:$0xf]  ;;  %v3814_v26 = vor.u32 %v4267_v5, %v3813_v45  ;;  %2522 = vmatpush.bf16.msra.mxu2 %v3558_v21  ;;  %v4287_v45 = vld [vmem:[%s4769_s29 + $0x6cc] sm:$0xf]  ;;  %v3658_v10 = vor.u32 %v4223_v18, %v3655_v19  ;;  %v3757_v44 = vld [vmem:[%s4769_s29 + $0x590] sm:$0xf] }
 0x137   : > { %v4139_v25 = vld [vmem:[%s4769_s29 + $0x224] sm:$0xf0]  ;;  %2497 = vmatmul.bf16.vlgmr.msra.gmra.mxu0 %v5207_v22  ;;  %v3911_v5 = vld [vmem:[%s4769_s29 + $0x6e8] sm:$0xf0]  ;;  %v4252_v18 = vld [vmem:[%s4769_s29 + $0x5ac] sm:$0xf0] }
 0x138   : > { %v3302_v35 = vor.u32 %v4139_v25, %v3301_v20  ;;  %2535 = vmatpush.bf16.msra.mxu3 %v3814_v26  ;;  %2541 = vmatpush.bf16.msrb.mxu0 %v3274_v42  ;;  %v3399_v9 = vld [vmem:[%s4769_s29 + $0x2e8] sm:$0xf0]  ;;  %v3914_v23 = vor.u32 %v4287_v45, %v3911_v5  ;;  %v4013_v45 = vld [vmem:[%s4769_s29 + $0x790] sm:$0xf] }
 0x139   : > { %2523 = vmatmul.bf16.vlgmr.msra.gmra.mxu2 %v5115_v58  ;;  %v3111_v15 = vld [vmem:[%s4769_s29 + $0xa8] sm:$0xf0]  ;;  %v3402_v42 = vor.u32 %v4159_v8, %v3399_v9  ;;  %v4316_v5 = vld [vmem:[%s4769_s29 + $0x7ac] sm:$0xf0] }
 0x13a   : > { %2567 = vmatpush.bf16.msrb.mxu2 %v3786_v51  ;;  %2509 = vmatpush.bf16.msra.mxu1 %v3302_v35  ;;  %v4215_v20 = vld [vmem:[%s4769_s29 + $0x48c] sm:$0xf]  ;;  %v3114_v24 = vor.u32 %v4087_v50, %v3111_v15  ;;  %v3501_v8 = vld [vmem:[%s4769_s29 + $0x390] sm:$0xf]  ;;  %v4014_v50 = vor.u32 %v4316_v5, %v4013_v45 }
 0x13b   : > { %2536 = vmatmul.bf16.vlgmr.msra.gmra.mxu3 %v5165_v48  ;;  %v3623_v21 = vld [vmem:[%s4769_s29 + $0x4a8] sm:$0xf0]  ;;  %v4188_v9 = vld [vmem:[%s4769_s29 + $0x3ac] sm:$0xf0] }
 0x13c   : > { %2580 = vmatpush.bf16.msrb.mxu3 %v4042_v43  ;;  %2542 = vmatpush.bf16.msrb.mxu0 %v3242_v57  ;;  %v4279_v25 = vld [vmem:[%s4769_s29 + $0x68c] sm:$0xf]  ;;  %v3626_v43 = vor.u32 %v4215_v20, %v3623_v21  ;;  %v4116_v15 = vld [vmem:[%s4769_s29 + $0x16c] sm:$0xf0] }
 0x13d   : > { %2510 = vmatmul.bf16.vlgmr.msra.gmra.mxu1 %v5258_v16  ;;  %v3879_v26 = vld [vmem:[%s4769_s29 + $0x6a8] sm:$0xf0]  ;;  %v3725_v20 = vld [vmem:[%s4769_s29 + $0x550] sm:$0xf] }
 0x13e   : > { %2554 = vmatpush.bf16.msrb.mxu1 %v3530_v52  ;;  %2568 = vmatpush.bf16.msrb.mxu2 %v3754_v36  ;;  %v4151_v27 = vld [vmem:[%s4769_s29 + $0x28c] sm:$0xf]  ;;  %v3882_v46 = vor.u32 %v4279_v25, %v3879_v26  ;;  %v4244_v21 = vld [vmem:[%s4769_s29 + $0x56c] sm:$0xf0] }
 0x13f   : > { %v3367_v51 = vld [vmem:[%s4769_s29 + $0x2a8] sm:$0xf0]  ;;  %v3981_v25 = vld [vmem:[%s4769_s29 + $0x750] sm:$0xf] }
 0x140   : > { %2581 = vmatpush.bf16.msrb.mxu3 %v4010_v61  ;;  %2543 = vmatpush.bf16.msrb.mxu0 %v3210_v56  ;;  %v4079_v47 = vld [vmem:[%s4769_s29 + $0x4c] sm:$0xf]  ;;  %v3370_v52 = vor.u32 %v4151_v27, %v3367_v51  ;;  %v4132_v56 = vld [vmem:[%s4769_s29 + $0x1ec] sm:$0xf0] }
 0x141   : > { %v3079_v53 = vld [vmem:[%s4769_s29 + $0x68] sm:$0xf0]  ;;  %v4308_v26 = vld [vmem:[%s4769_s29 + $0x76c] sm:$0xf0] }
 0x142   : > { %2555 = vmatpush.bf16.msrb.mxu1 %v3498_v31  ;;  %2569 = vmatpush.bf16.msrb.mxu2 %v3722_v59  ;;  %v4207_v28 = vld [vmem:[%s4769_s29 + $0x44c] sm:$0xf]  ;;  %v3082_v57 = vor.u32 %v4079_v47, %v3079_v53  ;;  %v3277_v31 = vld [vmem:[%s4769_s29 + $0x1d0] sm:$0xf]  ;;  %v3982_v47 = vor.u32 %v4308_v26, %v3981_v25 }
 0x143   : > { %v3591_v29 = vld [vmem:[%s4769_s29 + $0x468] sm:$0xf0]  ;;  %v3469_v27 = vld [vmem:[%s4769_s29 + $0x350] sm:$0xf] }
 0x144   : > { %2582 = vmatpush.bf16.msrb.mxu3 %v3978_v63  ;;  %2544 = vmatpush.bf16.msrb.mxu0 %v3178_v49  ;;  %v4271_v34 = vld [vmem:[%s4769_s29 + $0x64c] sm:$0xf]  ;;  %v3594_v61 = vor.u32 %v4207_v28, %v3591_v29  ;;  %v3533_v49 = vld [vmem:[%s4769_s29 + $0x3d0] sm:$0xf] }
 0x145   : > { %v3847_v35 = vld [vmem:[%s4769_s29 + $0x668] sm:$0xf0]  ;;  %v4180_v51 = vld [vmem:[%s4769_s29 + $0x36c] sm:$0xf0] }
 0x146   : > { %2556 = vmatpush.bf16.msrb.mxu1 %v3466_v14  ;;  %2570 = vmatpush.bf16.msrb.mxu2 %v3690_v12  ;;  %v4143_v54 = vld [vmem:[%s4769_s29 + $0x24c] sm:$0xf]  ;;  %v3850_v41 = vor.u32 %v4271_v34, %v3847_v35  ;;  %v3278_v14 = vor.u32 %v4132_v56, %v3277_v31  ;;  %v3245_v12 = vld [vmem:[%s4769_s29 + $0x190] sm:$0xf] }
 0x147   : > { %v3335_v30 = vld [vmem:[%s4769_s29 + $0x268] sm:$0xf0]  ;;  %v4108_v53 = vld [vmem:[%s4769_s29 + $0x12c] sm:$0xf0] }
 0x148   : > { %2583 = vmatpush.bf16.msrb.mxu3 %v3946_v4  ;;  %2545 = vmatpush.bf16.msrb.mxu0 %v3146_v7  ;;  %v4071_v36 = vld [vmem:[%s4769_s29 + $0xc] sm:$0xf]  ;;  %v3338_v59 = vor.u32 %v4143_v54, %v3335_v30  ;;  %v4046_v4 = vor.u32 %v4324_v3, %v4045_v2  ;;  %v3246_v7 = vor.u32 %v4124_v17, %v3245_v12  ;;  %v3693_v28 = vld [vmem:[%s4769_s29 + $0x510] sm:$0xf] }
 0x149   : > { %v3047_v0 = vld [vmem:[%s4769_s29 + $0x28] sm:$0xf0]  ;;  %v4236_v29 = vld [vmem:[%s4769_s29 + $0x52c] sm:$0xf0] }
 0x14a   : > { %2557 = vmatpush.bf16.msrb.mxu1 %v3434_v6  ;;  %2571 = vmatpush.bf16.msrb.mxu2 %v3658_v10  ;;  %v4199_v55 = vld [vmem:[%s4769_s29 + $0x40c] sm:$0xf]  ;;  %v3050_v63 = vor.u32 %v4071_v36, %v3047_v0  ;;  %v3534_v6 = vor.u32 %v4196_v60, %v3533_v49  ;;  %v3758_v10 = vor.u32 %v4252_v18, %v3757_v44  ;;  %v3949_v34 = vld [vmem:[%s4769_s29 + $0x710] sm:$0xf] }
 0x14b   : > { %v3559_v33 = vld [vmem:[%s4769_s29 + $0x428] sm:$0xf0]  ;;  %v4300_v35 = vld [vmem:[%s4769_s29 + $0x72c] sm:$0xf0]  ;;  %v3694_v36 = vor.u32 %v4236_v29, %v3693_v28 }
 0x14c   : > { %2584 = vmatpush.bf16.msrb.mxu3 %v3914_v23  ;;  %2546 = vmatpush.bf16.msrb.mxu0 %v3114_v24  ;;  %v4263_v62 = vld [vmem:[%s4769_s29 + $0x60c] sm:$0xf]  ;;  %v3562_v39 = vor.u32 %v4199_v55, %v3559_v33  ;;  %v3213_v23 = vld [vmem:[%s4769_s29 + $0x150] sm:$0xf] }
 0x14d   : > { %v3815_v37 = vld [vmem:[%s4769_s29 + $0x628] sm:$0xf0]  ;;  %v3214_v24 = vor.u32 %v4116_v15, %v3213_v23  ;;  %v3437_v54 = vld [vmem:[%s4769_s29 + $0x310] sm:$0xf] }
 0x14e   : > { %2558 = vmatpush.bf16.msrb.mxu1 %v3402_v42  ;;  %2572 = vmatpush.bf16.msrb.mxu2 %v3626_v43  ;;  %v4135_v11 = vld [vmem:[%s4769_s29 + $0x20c] sm:$0xf]  ;;  %v3818_v13 = vor.u32 %v4263_v62, %v3815_v37  ;;  %v3502_v42 = vor.u32 %v4188_v9, %v3501_v8  ;;  %v3726_v43 = vor.u32 %v4244_v21, %v3725_v20  ;;  %v4172_v30 = vld [vmem:[%s4769_s29 + $0x32c] sm:$0xf0] }
 0x14f   : > { %v3303_v32 = vld [vmem:[%s4769_s29 + $0x228] sm:$0xf0]  ;;  %v4100_v0 = vld [vmem:[%s4769_s29 + $0xec] sm:$0xf0]  ;;  %v3438_v31 = vor.u32 %v4172_v30, %v3437_v54  ;;  %v3535_v54 = vld [vmem:[%s4769_s29 + $0x3f0] sm:$0xf0] }
 0x150   : > { %2585 = vmatpush.bf16.msrb.mxu3 %v3882_v46  ;;  %2547 = vmatpush.bf16.msrb.mxu0 %v3082_v57  ;;  %v3306_v19 = vor.u32 %v4135_v11, %v3303_v32  ;;  %v3181_v46 = vld [vmem:[%s4769_s29 + $0x110] sm:$0xf] }
 0x151   : > { %v3182_v57 = vor.u32 %v4108_v53, %v3181_v46  ;;  %v3661_v55 = vld [vmem:[%s4769_s29 + $0x4d0] sm:$0xf]  ;;  %v4320_v46 = vld [vmem:[%s4769_s29 + $0x7d4] sm:$0xf] }
 0x152   : > { %2559 = vmatpush.bf16.msrb.mxu1 %v3370_v52  ;;  %2573 = vmatpush.bf16.msrb.mxu2 %v3594_v61  ;;  %v3470_v52 = vor.u32 %v4180_v51, %v3469_v27  ;;  %v3149_v61 = vld [vmem:[%s4769_s29 + $0xd0] sm:$0xf]  ;;  %v4256_v27 = vld [vmem:[%s4769_s29 + $0x5d4] sm:$0xf] }
 0x153   : > { %v4228_v33 = vld [vmem:[%s4769_s29 + $0x4ec] sm:$0xf0]  ;;  %v3150_v56 = vor.u32 %v4100_v0, %v3149_v61  ;;  %v4120_v61 = vld [vmem:[%s4769_s29 + $0x194] sm:$0xf] }
 0x154   : > { %2586 = vmatpush.bf16.msrb.mxu3 %v3850_v41  ;;  %2548 = vmatpush.bf16.msrb.mxu0 %v3050_v63  ;;  %v3950_v41 = vor.u32 %v4300_v35, %v3949_v34  ;;  %v3917_v62 = vld [vmem:[%s4769_s29 + $0x6d0] sm:$0xf]  ;;  %v4248_v0 = vld [vmem:[%s4769_s29 + $0x594] sm:$0xf] }
 0x155   : > { %v4292_v37 = vld [vmem:[%s4769_s29 + $0x6ec] sm:$0xf0] }
 0x156   : > { %2560 = vmatpush.bf16.msrb.mxu1 %v3338_v59  ;;  %2574 = vmatpush.bf16.msrb.mxu2 %v3562_v39  ;;  %v3662_v59 = vor.u32 %v4228_v33, %v3661_v55  ;;  %v3117_v63 = vld [vmem:[%s4769_s29 + $0x90] sm:$0xf]  ;;  %v3918_v2 = vor.u32 %v4292_v37, %v3917_v62  ;;  %v3759_v33 = vld [vmem:[%s4769_s29 + $0x5b0] sm:$0xf0] }
 0x157   : > { %2549 = vmatmul.bf16.vlgmr.msrb.gmra.mxu0 %v5207_v22  ;;  %v4092_v3 = vld [vmem:[%s4769_s29 + $0xac] sm:$0xf0]  ;;  %v4312_v62 = vld [vmem:[%s4769_s29 + $0x794] sm:$0xf] }
 0x158   : > { %2587 = vmatpush.bf16.msrb.mxu3 %v3818_v13  ;;  %2593 = vmatpush.bf16.msra.mxu0 %v3278_v14  ;;  %v3629_v11 = vld [vmem:[%s4769_s29 + $0x490] sm:$0xf]  ;;  %v3406_v14 = vor.u32 %v4164_v1, %v3405_v38  ;;  %v3118_v49 = vor.u32 %v4092_v3, %v3117_v63  ;;  %v4015_v37 = vld [vmem:[%s4769_s29 + $0x7b0] sm:$0xf0] }
 0x159   : > { %2575 = vmatmul.bf16.vlgmr.msrb.gmra.mxu2 %v5115_v58  ;;  %v4220_v32 = vld [vmem:[%s4769_s29 + $0x4ac] sm:$0xf0]  ;;  %v4184_v38 = vld [vmem:[%s4769_s29 + $0x394] sm:$0xf]  ;;  %v4018_v63 = vor.u32 %v4312_v62, %v4015_v37 }
 0x15a   : > { %2619 = vmatpush.bf16.msra.mxu2 %v3790_v40  ;;  %2561 = vmatpush.bf16.msrb.mxu1 %v3306_v19  ;;  %v3885_v39 = vld [vmem:[%s4769_s29 + $0x690] sm:$0xf]  ;;  %v3630_v12 = vor.u32 %v4220_v32, %v3629_v11  ;;  %v3503_v1 = vld [vmem:[%s4769_s29 + $0x3b0] sm:$0xf0] }
 0x15b   : > { %2588 = vmatmul.bf16.vlgmr.msrb.gmra.mxu3 %v5165_v48  ;;  %v4284_v13 = vld [vmem:[%s4769_s29 + $0x6ac] sm:$0xf0]  ;;  %v3215_v3 = vld [vmem:[%s4769_s29 + $0x170] sm:$0xf0] }
 0x15c   : > { %2632 = vmatpush.bf16.msra.mxu3 %v4046_v4  ;;  %2594 = vmatpush.bf16.msra.mxu0 %v3246_v7  ;;  %v3373_v60 = vld [vmem:[%s4769_s29 + $0x290] sm:$0xf]  ;;  %v3886_v17 = vor.u32 %v4284_v13, %v3885_v39  ;;  %v4240_v11 = vld [vmem:[%s4769_s29 + $0x554] sm:$0xf] }
 0x15d   : > { %2562 = vmatmul.bf16.vlgmr.msrb.gmra.mxu1 %v5258_v16  ;;  %v4156_v40 = vld [vmem:[%s4769_s29 + $0x2ac] sm:$0xf0]  ;;  %v3727_v32 = vld [vmem:[%s4769_s29 + $0x570] sm:$0xf0] }
 0x15e   : > { %2606 = vmatpush.bf16.msra.mxu1 %v3534_v6  ;;  %2620 = vmatpush.bf16.msra.mxu2 %v3758_v10  ;;  %v3085_v4 = vld [vmem:[%s4769_s29 + $0x50] sm:$0xf]  ;;  %v3374_v6 = vor.u32 %v4156_v40, %v3373_v60  ;;  %v4304_v39 = vld [vmem:[%s4769_s29 + $0x754] sm:$0xf] }
 0x15f   : > { %v4084_v44 = vld [vmem:[%s4769_s29 + $0x6c] sm:$0xf0]  ;;  %v3983_v13 = vld [vmem:[%s4769_s29 + $0x770] sm:$0xf0] }
 0x160   : > { %2633 = vmatpush.bf16.msra.mxu3 %v4014_v50  ;;  %2595 = vmatpush.bf16.msra.mxu0 %v3214_v24  ;;  %v3597_v18 = vld [vmem:[%s4769_s29 + $0x450] sm:$0xf]  ;;  %v3086_v9 = vor.u32 %v4084_v44, %v3085_v4  ;;  %v3279_v24 = vld [vmem:[%s4769_s29 + $0x1f0] sm:$0xf0]  ;;  %v3986_v4 = vor.u32 %v4304_v39, %v3983_v13 }
 0x161   : > { %v4212_v19 = vld [vmem:[%s4769_s29 + $0x46c] sm:$0xf0]  ;;  %v4176_v60 = vld [vmem:[%s4769_s29 + $0x354] sm:$0xf] }
 0x162   : > { %2607 = vmatpush.bf16.msra.mxu1 %v3502_v42  ;;  %2621 = vmatpush.bf16.msra.mxu2 %v3726_v43  ;;  %v3853_v45 = vld [vmem:[%s4769_s29 + $0x650] sm:$0xf]  ;;  %v3598_v10 = vor.u32 %v4212_v19, %v3597_v18  ;;  %v4128_v42 = vld [vmem:[%s4769_s29 + $0x1d4] sm:$0xf] }
 0x163   : > { %v4276_v5 = vld [vmem:[%s4769_s29 + $0x66c] sm:$0xf0]  ;;  %v3791_v43 = vld [vmem:[%s4769_s29 + $0x5f0] sm:$0xf0] }
 0x164   : > { %2634 = vmatpush.bf16.msra.mxu3 %v3982_v47  ;;  %2596 = vmatpush.bf16.msra.mxu0 %v3182_v57  ;;  %v3341_v7 = vld [vmem:[%s4769_s29 + $0x250] sm:$0xf]  ;;  %v3854_v20 = vor.u32 %v4276_v5, %v3853_v45  ;;  %v4047_v47 = vld [vmem:[%s4769_s29 + $0x7f0] sm:$0xf0]  ;;  %v3794_v30 = vor.u32 %v4256_v27, %v3791_v43 }
 0x165   : > { %v4148_v8 = vld [vmem:[%s4769_s29 + $0x26c] sm:$0xf0]  ;;  %v4192_v57 = vld [vmem:[%s4769_s29 + $0x3d4] sm:$0xf] }
 0x166   : > { %2608 = vmatpush.bf16.msra.mxu1 %v3470_v52  ;;  %2622 = vmatpush.bf16.msra.mxu2 %v3694_v36  ;;  %v3053_v23 = vld [vmem:[%s4769_s29 + $0x10] sm:$0xf]  ;;  %v3342_v51 = vor.u32 %v4148_v8, %v3341_v7  ;;  %v3282_v52 = vor.u32 %v4128_v42, %v3279_v24  ;;  %v4050_v36 = vor.u32 %v4320_v46, %v4047_v47  ;;  %v3471_v40 = vld [vmem:[%s4769_s29 + $0x370] sm:$0xf0] }
 0x167   : > { %v4076_v50 = vld [vmem:[%s4769_s29 + $0x2c] sm:$0xf0]  ;;  %v3183_v44 = vld [vmem:[%s4769_s29 + $0x130] sm:$0xf0] }
 0x168   : > { %2635 = vmatpush.bf16.msra.mxu3 %v3950_v41  ;;  %2597 = vmatpush.bf16.msra.mxu0 %v3150_v56  ;;  %v3565_v15 = vld [vmem:[%s4769_s29 + $0x410] sm:$0xf]  ;;  %v3054_v53 = vor.u32 %v4076_v50, %v3053_v23  ;;  %v3247_v41 = vld [vmem:[%s4769_s29 + $0x1b0] sm:$0xf0] }
 0x169   : > { %v4204_v21 = vld [vmem:[%s4769_s29 + $0x42c] sm:$0xf0]  ;;  %v3250_v56 = vor.u32 %v4120_v61, %v3247_v41  ;;  %v4232_v18 = vld [vmem:[%s4769_s29 + $0x514] sm:$0xf] }
 0x16a   : > { %2609 = vmatpush.bf16.msra.mxu1 %v3438_v31  ;;  %2623 = vmatpush.bf16.msra.mxu2 %v3662_v59  ;;  %v3821_v25 = vld [vmem:[%s4769_s29 + $0x610] sm:$0xf]  ;;  %v3566_v34 = vor.u32 %v4204_v21, %v3565_v15  ;;  %v3538_v31 = vor.u32 %v4192_v57, %v3535_v54  ;;  %v3762_v59 = vor.u32 %v4248_v0, %v3759_v33  ;;  %v3695_v19 = vld [vmem:[%s4769_s29 + $0x530] sm:$0xf0]  ;;  %v5487_v21 = vpop.f32.mrf.mxu2 }
 0x16b   : > { %v4268_v26 = vld [vmem:[%s4769_s29 + $0x62c] sm:$0xf0]  ;;  %v4296_v45 = vld [vmem:[%s4769_s29 + $0x714] sm:$0xf] }
 0x16c   : > { %2636 = vmatpush.bf16.msra.mxu3 %v3918_v2  ;;  %2598 = vmatpush.bf16.msra.mxu0 %v3118_v49  ;;  %v3309_v28 = vld [vmem:[%s4769_s29 + $0x210] sm:$0xf]  ;;  %v3822_v35 = vor.u32 %v4268_v26, %v3821_v25  ;;  %v4112_v2 = vld [vmem:[%s4769_s29 + $0x154] sm:$0xf]  ;;  %v5489_v25 = vpop.f32.mrf.mxu3 }
 0x16d   : > { %v4140_v29 = vld [vmem:[%s4769_s29 + $0x22c] sm:$0xf0]  ;;  %v3218_v49 = vor.u32 %v4112_v2, %v3215_v3  ;;  %v3951_v5 = vld [vmem:[%s4769_s29 + $0x730] sm:$0xf0] }
 0x16e   : > { %2610 = vmatpush.bf16.msra.mxu1 %v3406_v14  ;;  %2624 = vmatpush.bf16.msra.mxu2 %v3630_v12  ;;  %v3310_v55 = vor.u32 %v4140_v29, %v3309_v28  ;;  %v3506_v14 = vor.u32 %v4184_v38, %v3503_v1  ;;  %v3730_v12 = vor.u32 %v4240_v11, %v3727_v32  ;;  %v4168_v8 = vld [vmem:[%s4769_s29 + $0x314] sm:$0xf] }
 0x16f   : > { %v3954_v23 = vor.u32 %v4296_v45, %v3951_v5  ;;  %v4096_v50 = vld [vmem:[%s4769_s29 + $0xd4] sm:$0xf]  ;;  %v4261_v45 = vld [vmem:[%s4769_s29 + $0x5f4] sm:$0xf0] }
 0x170   : > { %2637 = vmatpush.bf16.msra.mxu3 %v3886_v17  ;;  %2599 = vmatpush.bf16.msra.mxu0 %v3086_v9  ;;  %v4104_v17 = vld [vmem:[%s4769_s29 + $0x114] sm:$0xf] }
 0x171   : > { %v3186_v7 = vor.u32 %v4104_v17, %v3183_v44  ;;  %v3439_v9 = vld [vmem:[%s4769_s29 + $0x330] sm:$0xf0]  ;;  %v5507_v37 = vpop.f32.mrf.mxu0  ;;  %v3285_v17 = vld [vmem:[%s4769_s29 + $0x1d8] sm:$0xf] }
 0x172   : > { %2611 = vmatpush.bf16.msra.mxu1 %v3374_v6  ;;  %2625 = vmatpush.bf16.msra.mxu2 %v3598_v10  ;;  %v3474_v6 = vor.u32 %v4176_v60, %v3471_v40  ;;  %v3698_v10 = vor.u32 %v4232_v18, %v3695_v19  ;;  %v3151_v15 = vld [vmem:[%s4769_s29 + $0xf0] sm:$0xf0]  ;;  %v3442_v27 = vor.u32 %v4168_v8, %v3439_v9  ;;  %v4133_v18 = vld [vmem:[%s4769_s29 + $0x1f4] sm:$0xf0] }
 0x173   : > { %v3663_v26 = vld [vmem:[%s4769_s29 + $0x4f0] sm:$0xf0]  ;;  %v3797_v19 = vld [vmem:[%s4769_s29 + $0x5d8] sm:$0xf] }
 0x174   : > { %2638 = vmatpush.bf16.msra.mxu3 %v3854_v20  ;;  %2600 = vmatpush.bf16.msra.mxu0 %v3054_v53  ;;  %v4224_v20 = vld [vmem:[%s4769_s29 + $0x4d4] sm:$0xf]  ;;  %v4325_v8 = vld [vmem:[%s4769_s29 + $0x7f4] sm:$0xf0] }
 0x175   : > { %v4288_v42 = vld [vmem:[%s4769_s29 + $0x6d4] sm:$0xf]  ;;  %v3666_v47 = vor.u32 %v4224_v20, %v3663_v26  ;;  %v3286_v20 = vor.u32 %v4133_v18, %v3285_v17  ;;  %v3798_v26 = vor.u32 %v4261_v45, %v3797_v19  ;;  %v4229_v17 = vld [vmem:[%s4769_s29 + $0x4f4] sm:$0xf0] }
 0x176   : > { %2612 = vmatpush.bf16.msra.mxu1 %v3342_v51  ;;  %2626 = vmatpush.bf16.msra.mxu2 %v3566_v34  ;;  %v3919_v24 = vld [vmem:[%s4769_s29 + $0x6f0] sm:$0xf0]  ;;  %v3154_v51 = vor.u32 %v4096_v50, %v3151_v15  ;;  %v4197_v50 = vld [vmem:[%s4769_s29 + $0x3f4] sm:$0xf0] }
 0x177   : > { %2601 = vmatmul.bf16.vlgmr.msra.gmra.mxu0 %v5207_v22  ;;  %v4160_v43 = vld [vmem:[%s4769_s29 + $0x2d4] sm:$0xf]  ;;  %v3922_v53 = vor.u32 %v4288_v42, %v3919_v24  ;;  %v3253_v42 = vld [vmem:[%s4769_s29 + $0x198] sm:$0xf] }
 0x178   : > { %2639 = vmatpush.bf16.msra.mxu3 %v3822_v35  ;;  %2645 = vmatpush.bf16.msrb.mxu0 %v3282_v52  ;;  %v3407_v46 = vld [vmem:[%s4769_s29 + $0x2f0] sm:$0xf0]  ;;  %v3925_v19 = vld [vmem:[%s4769_s29 + $0x6d8] sm:$0xf] }
 0x179   : > { %2627 = vmatmul.bf16.vlgmr.msra.gmra.mxu2 %v5115_v58  ;;  %v4088_v28 = vld [vmem:[%s4769_s29 + $0x94] sm:$0xf]  ;;  %v3410_v54 = vor.u32 %v4160_v43, %v3407_v46  ;;  %v2396_v15 = vpop.f32.mrf.mxu0  ;;  %v3765_v43 = vld [vmem:[%s4769_s29 + $0x598] sm:$0xf] }
 0x17a   : > { %2671 = vmatpush.bf16.msrb.mxu2 %v3794_v30  ;;  %2613 = vmatpush.bf16.msra.mxu1 %v3310_v55  ;;  %v3119_v29 = vld [vmem:[%s4769_s29 + $0xb0] sm:$0xf0]  ;;  %v4253_v46 = vld [vmem:[%s4769_s29 + $0x5b4] sm:$0xf0] }
 0x17b   : > { %2640 = vmatmul.bf16.vlgmr.msra.gmra.mxu3 %v5165_v48  ;;  %v4216_v34 = vld [vmem:[%s4769_s29 + $0x494] sm:$0xf]  ;;  %v3122_v30 = vor.u32 %v4088_v28, %v3119_v29  ;;  %v4317_v28 = vld [vmem:[%s4769_s29 + $0x7b4] sm:$0xf0] }
 0x17c   : > { %2684 = vmatpush.bf16.msrb.mxu3 %v4050_v36  ;;  %2646 = vmatpush.bf16.msrb.mxu0 %v3250_v56  ;;  %v3631_v35 = vld [vmem:[%s4769_s29 + $0x4b0] sm:$0xf0]  ;;  %v3509_v29 = vld [vmem:[%s4769_s29 + $0x398] sm:$0xf] }
 0x17d   : > { %2614 = vmatmul.bf16.vlgmr.msra.gmra.mxu1 %v5258_v16  ;;  %v4280_v52 = vld [vmem:[%s4769_s29 + $0x694] sm:$0xf]  ;;  %v3634_v41 = vor.u32 %v4216_v34, %v3631_v35  ;;  %v4189_v34 = vld [vmem:[%s4769_s29 + $0x3b4] sm:$0xf0] }
 0x17e   : > { %2658 = vmatpush.bf16.msrb.mxu1 %v3538_v31  ;;  %2672 = vmatpush.bf16.msrb.mxu2 %v3762_v59  ;;  %v3887_v57 = vld [vmem:[%s4769_s29 + $0x6b0] sm:$0xf0]  ;;  %v2422_v31 = vpop.f32.mrf.mxu2  ;;  %v2435_v59 = vpop.f32.mrf.mxu3  ;;  %v4293_v45 = vld [vmem:[%s4769_s29 + $0x6f4] sm:$0xf0] }
 0x17f   : > { %v4152_v36 = vld [vmem:[%s4769_s29 + $0x294] sm:$0xf]  ;;  %v3890_v0 = vor.u32 %v4280_v52, %v3887_v57  ;;  %v3766_v52 = vor.u32 %v4253_v46, %v3765_v43  ;;  %v3221_v57 = vld [vmem:[%s4769_s29 + $0x158] sm:$0xf] }
 0x180   : > { %2685 = vmatpush.bf16.msrb.mxu3 %v4018_v63  ;;  %2647 = vmatpush.bf16.msrb.mxu0 %v3218_v49  ;;  %v3375_v61 = vld [vmem:[%s4769_s29 + $0x2b0] sm:$0xf0]  ;;  %v4109_v59 = vld [vmem:[%s4769_s29 + $0x134] sm:$0xf0] }
 0x181   : > { %v4080_v55 = vld [vmem:[%s4769_s29 + $0x54] sm:$0xf]  ;;  %v3378_v63 = vor.u32 %v4152_v36, %v3375_v61  ;;  %v3733_v36 = vld [vmem:[%s4769_s29 + $0x558] sm:$0xf] }
 0x182   : > { %2659 = vmatpush.bf16.msrb.mxu1 %v3506_v14  ;;  %2673 = vmatpush.bf16.msrb.mxu2 %v3730_v12  ;;  %v3087_v33 = vld [vmem:[%s4769_s29 + $0x70] sm:$0xf0]  ;;  %v4245_v61 = vld [vmem:[%s4769_s29 + $0x574] sm:$0xf0] }
 0x183   : > { %v4208_v62 = vld [vmem:[%s4769_s29 + $0x454] sm:$0xf]  ;;  %v3090_v2 = vor.u32 %v4080_v55, %v3087_v33  ;;  %v4309_v55 = vld [vmem:[%s4769_s29 + $0x774] sm:$0xf0] }
 0x184   : > { %2686 = vmatpush.bf16.msrb.mxu3 %v3986_v4  ;;  %2648 = vmatpush.bf16.msrb.mxu0 %v3186_v7  ;;  %v3599_v56 = vld [vmem:[%s4769_s29 + $0x470] sm:$0xf0]  ;;  %v4053_v7 = vld [vmem:[%s4769_s29 + $0x7d8] sm:$0xf] }
 0x185   : > { %v4272_v38 = vld [vmem:[%s4769_s29 + $0x654] sm:$0xf]  ;;  %v3602_v39 = vor.u32 %v4208_v62, %v3599_v56  ;;  %v3477_v33 = vld [vmem:[%s4769_s29 + $0x358] sm:$0xf]  ;;  %v3734_v56 = vor.u32 %v4245_v61, %v3733_v36 }
 0x186   : > { %2660 = vmatpush.bf16.msrb.mxu1 %v3474_v6  ;;  %2674 = vmatpush.bf16.msrb.mxu2 %v3698_v10  ;;  %v3855_v1 = vld [vmem:[%s4769_s29 + $0x670] sm:$0xf0]  ;;  %v4181_v62 = vld [vmem:[%s4769_s29 + $0x374] sm:$0xf0] }
 0x187   : > { %v4144_v3 = vld [vmem:[%s4769_s29 + $0x254] sm:$0xf]  ;;  %v3858_v13 = vor.u32 %v4272_v38, %v3855_v1  ;;  %v3189_v38 = vld [vmem:[%s4769_s29 + $0x118] sm:$0xf] }
 0x188   : > { %2687 = vmatpush.bf16.msrb.mxu3 %v3954_v23  ;;  %2649 = vmatpush.bf16.msrb.mxu0 %v3154_v51  ;;  %v3343_v11 = vld [vmem:[%s4769_s29 + $0x270] sm:$0xf0]  ;;  %v3541_v23 = vld [vmem:[%s4769_s29 + $0x3d8] sm:$0xf] }
 0x189   : > { %v4072_v32 = vld [vmem:[%s4769_s29 + $0x14] sm:$0xf]  ;;  %v3346_v44 = vor.u32 %v4144_v3, %v3343_v11  ;;  %v4125_v51 = vld [vmem:[%s4769_s29 + $0x1b4] sm:$0xf0]  ;;  %v3478_v3 = vor.u32 %v4181_v62, %v3477_v33 }
 0x18a   : > { %2661 = vmatpush.bf16.msrb.mxu1 %v3442_v27  ;;  %2675 = vmatpush.bf16.msrb.mxu2 %v3666_v47  ;;  %v3055_v14 = vld [vmem:[%s4769_s29 + $0x30] sm:$0xf0]  ;;  %v4054_v27 = vor.u32 %v4325_v8, %v4053_v7  ;;  %v3542_v47 = vor.u32 %v4197_v50, %v3541_v23  ;;  %v3254_v35 = vor.u32 %v4125_v51, %v3253_v42  ;;  %v3957_v11 = vld [vmem:[%s4769_s29 + $0x718] sm:$0xf]  ;;  %v709_v42 = vld [vmem:[#allocation8] sm:$0xff] }
 0x18b   : > { %v4200_v49 = vld [vmem:[%s4769_s29 + $0x414] sm:$0xf]  ;;  %v3058_v5 = vor.u32 %v4072_v32, %v3055_v14  ;;  %v4301_v32 = vld [vmem:[%s4769_s29 + $0x734] sm:$0xf0]  ;;  %v3190_v14 = vor.u32 %v4109_v59, %v3189_v38  ;;  %v3926_v50 = vor.u32 %v4293_v45, %v3925_v19  ;;  %v5576_v43 = vpop.f32.mrf.mxu2  ;;  %v4321_v19 = vld [vmem:[%s4769_s29 + $0x7dc] sm:$0xf] }
 0x18c   : > { %2688 = vmatpush.bf16.msrb.mxu3 %v3922_v53  ;;  %2650 = vmatpush.bf16.msrb.mxu0 %v3122_v30  ;;  %v3567_v60 = vld [vmem:[%s4769_s29 + $0x430] sm:$0xf0]  ;;  %v4021_v53 = vld [vmem:[%s4769_s29 + $0x798] sm:$0xf]  ;;  %v4055_v45 = vld [vmem:[%s4769_s29 + $0x7f8] sm:$0xf0] }
 0x18d   : > { %v4136_v40 = vld [vmem:[%s4769_s29 + $0x214] sm:$0xf]  ;;  %v3570_v9 = vor.u32 %v4200_v49, %v3567_v60  ;;  %v4117_v30 = vld [vmem:[%s4769_s29 + $0x174] sm:$0xf0] }
 0x18e   : > { %2662 = vmatpush.bf16.msrb.mxu1 %v3410_v54  ;;  %2676 = vmatpush.bf16.msrb.mxu2 %v3634_v41  ;;  %v4264_v12 = vld [vmem:[%s4769_s29 + $0x614] sm:$0xf]  ;;  %v4022_v54 = vor.u32 %v4317_v28, %v4021_v53  ;;  %v3510_v41 = vor.u32 %v4189_v34, %v3509_v29  ;;  %v3222_v31 = vor.u32 %v4117_v30, %v3221_v57  ;;  %v3157_v60 = vld [vmem:[%s4769_s29 + $0xd8] sm:$0xf]  ;;  %v5581_v53 = vpop.f32.mrf.mxu3 }
 0x18f   : > { %v3823_v4 = vld [vmem:[%s4769_s29 + $0x630] sm:$0xf0]  ;;  %v4165_v7 = vld [vmem:[%s4769_s29 + $0x2f4] sm:$0xf0] }
 0x190   : > { %2689 = vmatpush.bf16.msrb.mxu3 %v3890_v0  ;;  %2651 = vmatpush.bf16.msrb.mxu0 %v3090_v2  ;;  %v3311_v6 = vld [vmem:[%s4769_s29 + $0x230] sm:$0xf0]  ;;  %v3826_v10 = vor.u32 %v4264_v12, %v3823_v4  ;;  %v3989_v0 = vld [vmem:[%s4769_s29 + $0x758] sm:$0xf] }
 0x191   : > { %v3314_v24 = vor.u32 %v4136_v40, %v3311_v6  ;;  %v3990_v1 = vor.u32 %v4309_v55, %v3989_v0  ;;  %v4237_v2 = vld [vmem:[%s4769_s29 + $0x534] sm:$0xf0]  ;;  %v3958_v40 = vor.u32 %v4301_v32, %v3957_v11 }
 0x192   : > { %2663 = vmatpush.bf16.msrb.mxu1 %v3378_v63  ;;  %2677 = vmatpush.bf16.msrb.mxu2 %v3602_v39  ;;  %v3701_v63 = vld [vmem:[%s4769_s29 + $0x518] sm:$0xf] }
 0x193   : > { %v3445_v39 = vld [vmem:[%s4769_s29 + $0x318] sm:$0xf]  ;;  %v3702_v49 = vor.u32 %v4237_v2, %v3701_v63 }
 0x194   : > { %2690 = vmatpush.bf16.msrb.mxu3 %v3858_v13  ;;  %2652 = vmatpush.bf16.msrb.mxu0 %v3058_v5  ;;  %v4173_v13 = vld [vmem:[%s4769_s29 + $0x334] sm:$0xf0] }
 0x195   : > { %v4101_v12 = vld [vmem:[%s4769_s29 + $0xf4] sm:$0xf0]  ;;  %v3446_v18 = vor.u32 %v4173_v13, %v3445_v39  ;;  %v4129_v13 = vld [vmem:[%s4769_s29 + $0x1dc] sm:$0xf] }
 0x196   : > { %2664 = vmatpush.bf16.msrb.mxu1 %v3346_v44  ;;  %2678 = vmatpush.bf16.msrb.mxu2 %v3570_v9  ;;  %v3669_v4 = vld [vmem:[%s4769_s29 + $0x4d8] sm:$0xf]  ;;  %v2407_v44 = vpop.f32.mrf.mxu1  ;;  %v3158_v8 = vor.u32 %v4101_v12, %v3157_v60  ;;  %v4193_v60 = vld [vmem:[%s4769_s29 + $0x3dc] sm:$0xf] }
 0x197   : > { %2653 = vmatmul.bf16.vlgmr.msrb.gmra.mxu0 %v5207_v22  ;;  %v2408_v5 = vadd.f32 %v2407_v44, %v5507_v37  ;;  %v3413_v6 = vld [vmem:[%s4769_s29 + $0x2d8] sm:$0xf]  ;;  %v3670_v9 = vor.u32 %v4229_v17, %v3669_v4  ;;  %v5572_v37 = vpop.f32.mrf.mxu0  ;;  %v3799_v12 = vld [vmem:[%s4769_s29 + $0x5f8] sm:$0xf0]  ;;  %v2487_v4 = vpop.f32.mrf.mxu3 }
 0x198   : > { %2691 = vmatpush.bf16.msrb.mxu3 %v3826_v10  ;;  %2697 = vmatpush.bf16.msra.mxu0 %v3286_v20  ;;  %v3125_v10 = vld [vmem:[%s4769_s29 + $0x98] sm:$0xf]  ;;  %v3671_v4 = vld [vmem:[%s4769_s29 + $0x4f8] sm:$0xf0] }
 0x199   : > { %2679 = vmatmul.bf16.vlgmr.msrb.gmra.mxu2 %v5115_v58  ;;  %v2421_v23 = vadd.f32 %v5487_v21, %v2408_v5  ;;  %v4093_v15 = vld [vmem:[%s4769_s29 + $0xb4] sm:$0xf0] }
 0x19a   : > { %2723 = vmatpush.bf16.msra.mxu2 %v3798_v26  ;;  %2665 = vmatpush.bf16.msrb.mxu1 %v3314_v24  ;;  %v3637_v20 = vld [vmem:[%s4769_s29 + $0x498] sm:$0xf]  ;;  %v3414_v24 = vor.u32 %v4165_v7, %v3413_v6  ;;  %v3126_v28 = vor.u32 %v4093_v15, %v3125_v10  ;;  %v3255_v10 = vld [vmem:[%s4769_s29 + $0x1b8] sm:$0xf0]  ;;  %v4058_v15 = vor.u32 %v4321_v19, %v4055_v45 }
 0x19b   : > { %2692 = vmatmul.bf16.vlgmr.msrb.gmra.mxu3 %v5165_v48  ;;  %v4221_v26 = vld [vmem:[%s4769_s29 + $0x4b4] sm:$0xf0]  ;;  %v2434_v21 = vadd.f32 %v5489_v25, %v2421_v23 }
 0x19c   : > { %2736 = vmatpush.bf16.msra.mxu3 %v4054_v27  ;;  %2698 = vmatpush.bf16.msra.mxu0 %v3254_v35  ;;  %v3893_v27 = vld [vmem:[%s4769_s29 + $0x698] sm:$0xf]  ;;  %v3638_v29 = vor.u32 %v4221_v26, %v3637_v20  ;;  %v4185_v20 = vld [vmem:[%s4769_s29 + $0x39c] sm:$0xf] }
 0x19d   : > { %2666 = vmatmul.bf16.vlgmr.msrb.gmra.mxu1 %v5258_v16  ;;  %v4285_v51 = vld [vmem:[%s4769_s29 + $0x6b4] sm:$0xf0]  ;;  %v2801_v35 = vadd.f32 %v2434_v21, %v709_v42  ;;  %v4249_v26 = vld [vmem:[%s4769_s29 + $0x59c] sm:$0xf] }
 0x19e   : > { %2710 = vmatpush.bf16.msra.mxu1 %v3542_v47  ;;  %2724 = vmatpush.bf16.msra.mxu2 %v3766_v52  ;;  %v3381_v46 = vld [vmem:[%s4769_s29 + $0x298] sm:$0xf]  ;;  %v3894_v52 = vor.u32 %v4285_v51, %v3893_v27  ;;  %v2409_v30 = vpop.f32.mrf.mxu1  ;;  %v3767_v42 = vld [vmem:[%s4769_s29 + $0x5b8] sm:$0xf0] }
 0x19f   : > { %v4157_v47 = vld [vmem:[%s4769_s29 + $0x2b4] sm:$0xf0]  ;;  %2809 = vst [vmem:[#allocation8] sm:$0xff] %v2801_v35  ;;  %v2448_v11 = vpop.f32.mrf.mxu0  ;;  %v3511_v27 = vld [vmem:[%s4769_s29 + $0x3b8] sm:$0xf0] }
 0x1a0   : > { %2737 = vmatpush.bf16.msra.mxu3 %v4022_v54  ;;  %2699 = vmatpush.bf16.msra.mxu0 %v3222_v31  ;;  %v3093_v34 = vld [vmem:[%s4769_s29 + $0x58] sm:$0xf]  ;;  %v3382_v36 = vor.u32 %v4157_v47, %v3381_v46  ;;  %v4313_v51 = vld [vmem:[%s4769_s29 + $0x79c] sm:$0xf]  ;;  %v3514_v35 = vor.u32 %v4185_v20, %v3511_v27 }
 0x1a1   : > { %v4085_v57 = vld [vmem:[%s4769_s29 + $0x74] sm:$0xf0]  ;;  %v4023_v21 = vld [vmem:[%s4769_s29 + $0x7b8] sm:$0xf0] }
 0x1a2   : > { %2711 = vmatpush.bf16.msra.mxu1 %v3510_v41  ;;  %2725 = vmatpush.bf16.msra.mxu2 %v3734_v56  ;;  %v3605_v25 = vld [vmem:[%s4769_s29 + $0x458] sm:$0xf]  ;;  %v3094_v33 = vor.u32 %v4085_v57, %v3093_v34  ;;  %v3223_v34 = vld [vmem:[%s4769_s29 + $0x178] sm:$0xf0] }
 0x1a3   : > { %v4213_v54 = vld [vmem:[%s4769_s29 + $0x474] sm:$0xf0]  ;;  %v3479_v30 = vld [vmem:[%s4769_s29 + $0x378] sm:$0xf0] }
 0x1a4   : > { %2738 = vmatpush.bf16.msra.mxu3 %v3990_v1  ;;  %2700 = vmatpush.bf16.msra.mxu0 %v3190_v14  ;;  %v3861_v61 = vld [vmem:[%s4769_s29 + $0x658] sm:$0xf]  ;;  %v3606_v62 = vor.u32 %v4213_v54, %v3605_v25  ;;  %v3287_v14 = vld [vmem:[%s4769_s29 + $0x1f8] sm:$0xf0] }
 0x1a5   : > { %v4277_v41 = vld [vmem:[%s4769_s29 + $0x674] sm:$0xf0]  ;;  %v3290_v6 = vor.u32 %v4129_v13, %v3287_v14  ;;  %v4177_v25 = vld [vmem:[%s4769_s29 + $0x35c] sm:$0xf] }
 0x1a6   : > { %2712 = vmatpush.bf16.msra.mxu1 %v3478_v3  ;;  %2726 = vmatpush.bf16.msra.mxu2 %v3702_v49  ;;  %v3349_v0 = vld [vmem:[%s4769_s29 + $0x258] sm:$0xf]  ;;  %v3862_v38 = vor.u32 %v4277_v41, %v3861_v61  ;;  %v2474_v49 = vpop.f32.mrf.mxu2  ;;  %v2459_v23 = vpop.f32.mrf.mxu1  ;;  %v4241_v54 = vld [vmem:[%s4769_s29 + $0x55c] sm:$0xf] }
 0x1a7   : > { %v4149_v55 = vld [vmem:[%s4769_s29 + $0x274] sm:$0xf0]  ;;  %v3991_v61 = vld [vmem:[%s4769_s29 + $0x778] sm:$0xf0] }
 0x1a8   : > { %2739 = vmatpush.bf16.msra.mxu3 %v3958_v40  ;;  %2701 = vmatpush.bf16.msra.mxu0 %v3158_v8  ;;  %v3061_v31 = vld [vmem:[%s4769_s29 + $0x18] sm:$0xf]  ;;  %v3350_v32 = vor.u32 %v4149_v55, %v3349_v0  ;;  %v4257_v40 = vld [vmem:[%s4769_s29 + $0x5dc] sm:$0xf] }
 0x1a9   : > { %v4077_v56 = vld [vmem:[%s4769_s29 + $0x34] sm:$0xf0]  ;;  %v3802_v8 = vor.u32 %v4257_v40, %v3799_v12  ;;  %v4105_v55 = vld [vmem:[%s4769_s29 + $0x11c] sm:$0xf] }
 0x1aa   : > { %2713 = vmatpush.bf16.msra.mxu1 %v3446_v18  ;;  %2727 = vmatpush.bf16.msra.mxu2 %v3670_v9  ;;  %v3317_v1 = vld [vmem:[%s4769_s29 + $0x218] sm:$0xf]  ;;  %v3062_v17 = vor.u32 %v4077_v56, %v3061_v31  ;;  %v3543_v18 = vld [vmem:[%s4769_s29 + $0x3f8] sm:$0xf0]  ;;  %v3482_v56 = vor.u32 %v4177_v25, %v3479_v30 }
 0x1ab   : > { %v4141_v59 = vld [vmem:[%s4769_s29 + $0x234] sm:$0xf0]  ;;  %v4121_v9 = vld [vmem:[%s4769_s29 + $0x19c] sm:$0xf] }
 0x1ac   : > { %2740 = vmatpush.bf16.msra.mxu3 %v3926_v50  ;;  %2702 = vmatpush.bf16.msra.mxu0 %v3126_v28  ;;  %v3573_v63 = vld [vmem:[%s4769_s29 + $0x418] sm:$0xf]  ;;  %v3318_v7 = vor.u32 %v4141_v59, %v3317_v1  ;;  %v3546_v50 = vor.u32 %v4193_v60, %v3543_v18  ;;  %v3258_v46 = vor.u32 %v4121_v9, %v3255_v10  ;;  %v4233_v1 = vld [vmem:[%s4769_s29 + $0x51c] sm:$0xf] }
 0x1ad   : > { %v4205_v2 = vld [vmem:[%s4769_s29 + $0x434] sm:$0xf0]  ;;  %v3770_v28 = vor.u32 %v4249_v26, %v3767_v42  ;;  %v3703_v59 = vld [vmem:[%s4769_s29 + $0x538] sm:$0xf0] }
 0x1ae   : > { %2714 = vmatpush.bf16.msra.mxu1 %v3414_v24  ;;  %2728 = vmatpush.bf16.msra.mxu2 %v3638_v29  ;;  %v3829_v3 = vld [vmem:[%s4769_s29 + $0x618] sm:$0xf]  ;;  %v3574_v44 = vor.u32 %v4205_v2, %v3573_v63  ;;  %v2460_v24 = vadd.f32 %v2459_v23, %v5572_v37  ;;  %v710_v37 = vld [vmem:[#allocation8 + $0x8] sm:$0xff]  ;;  %v4113_v29 = vld [vmem:[%s4769_s29 + $0x15c] sm:$0xf]  ;;  %v2461_v31 = vpop.f32.mrf.mxu1 }
 0x1af   : > { %v4269_v39 = vld [vmem:[%s4769_s29 + $0x634] sm:$0xf0]  ;;  %v3226_v0 = vor.u32 %v4113_v29, %v3223_v34  ;;  %v3447_v63 = vld [vmem:[%s4769_s29 + $0x338] sm:$0xf0] }
 0x1b0   : > { %2741 = vmatpush.bf16.msra.mxu3 %v3894_v52  ;;  %2703 = vmatpush.bf16.msra.mxu0 %v3094_v33  ;;  %v3830_v5 = vor.u32 %v4269_v39, %v3829_v3  ;;  %v2473_v47 = vadd.f32 %v5576_v43, %v2460_v24  ;;  %v4026_v52 = vor.u32 %v4313_v51, %v4023_v21  ;;  %v3735_v43 = vld [vmem:[%s4769_s29 + $0x578] sm:$0xf0] }
 0x1b1   : > { %v3191_v33 = vld [vmem:[%s4769_s29 + $0x138] sm:$0xf0] }
 0x1b2   : > { %2715 = vmatpush.bf16.msra.mxu1 %v3382_v36  ;;  %2729 = vmatpush.bf16.msra.mxu2 %v3606_v62  ;;  %v2486_v57 = vadd.f32 %v5581_v53, %v2473_v47  ;;  %v4305_v36 = vld [vmem:[%s4769_s29 + $0x75c] sm:$0xf]  ;;  %v3738_v53 = vor.u32 %v4241_v54, %v3735_v43  ;;  %v3194_v11 = vor.u32 %v4105_v55, %v3191_v33 }
 0x1b3   : > { %v4169_v62 = vld [vmem:[%s4769_s29 + $0x31c] sm:$0xf] }
 0x1b4   : > { %2742 = vmatpush.bf16.msra.mxu3 %v3862_v38  ;;  %2704 = vmatpush.bf16.msra.mxu0 %v3062_v17  ;;  %v2802_v41 = vadd.f32 %v2486_v57, %v710_v37  ;;  %v3994_v38 = vor.u32 %v4305_v36, %v3991_v61  ;;  %v4297_v2 = vld [vmem:[%s4769_s29 + $0x71c] sm:$0xf]  ;;  %v2498_v14 = vpop.f32.mrf.mxu0  ;;  %v3450_v49 = vor.u32 %v4169_v62, %v3447_v63 }
 0x1b5   : > { %v3959_v3 = vld [vmem:[%s4769_s29 + $0x738] sm:$0xf0] }
 0x1b6   : > { %2716 = vmatpush.bf16.msra.mxu1 %v3350_v32  ;;  %2730 = vmatpush.bf16.msra.mxu2 %v3574_v44  ;;  %2810 = vst [vmem:[#allocation8 + $0x8] sm:$0xff] %v2802_v41  ;;  %v3706_v32 = vor.u32 %v4233_v1, %v3703_v59  ;;  %v4097_v39 = vld [vmem:[%s4769_s29 + $0xdc] sm:$0xf]  ;;  %v3962_v60 = vor.u32 %v4297_v2, %v3959_v3 }
 0x1b7   : > { %2705 = vmatmul.bf16.vlgmr.msra.gmra.mxu0 %v5207_v22  ;;  %v3159_v13 = vld [vmem:[%s4769_s29 + $0xf8] sm:$0xf0] }
 0x1b8   : > { %2743 = vmatpush.bf16.msra.mxu3 %v3830_v5  ;;  %2749 = vmatpush.bf16.msrb.mxu0 %v3290_v6  ;;  %v4161_v40 = vld [vmem:[%s4769_s29 + $0x2dc] sm:$0xf]  ;;  %v3162_v19 = vor.u32 %v4097_v39, %v3159_v13 }
 0x1b9   : > { %2731 = vmatmul.bf16.vlgmr.msra.gmra.mxu2 %v5115_v58  ;;  %v4225_v12 = vld [vmem:[%s4769_s29 + $0x4dc] sm:$0xf] }
 0x1ba   : > { %2717 = vmatpush.bf16.msra.mxu1 %v3318_v7  ;;  %2775 = vmatpush.bf16.msrb.mxu2 %v3802_v8  ;;  %v3415_v17 = vld [vmem:[%s4769_s29 + $0x2f8] sm:$0xf0]  ;;  %v3674_v45 = vor.u32 %v4225_v12, %v3671_v4  ;;  %v2511_v7 = vpop.f32.mrf.mxu1 }
 0x1bb   : > { %2744 = vmatmul.bf16.vlgmr.msra.gmra.mxu3 %v5165_v48  ;;  %v4289_v44 = vld [vmem:[%s4769_s29 + $0x6dc] sm:$0xf]  ;;  %v3418_v8 = vor.u32 %v4161_v40, %v3415_v17 }
 0x1bc   : > { %2788 = vmatpush.bf16.msrb.mxu3 %v4058_v15  ;;  %2750 = vmatpush.bf16.msrb.mxu0 %v3258_v46  ;;  %v3927_v18 = vld [vmem:[%s4769_s29 + $0x6f8] sm:$0xf0]  ;;  %v2512_v15 = vadd.f32 %v2511_v7, %v2498_v14  ;;  %v2524_v24 = vpop.f32.mrf.mxu2  ;;  %v2500_v29 = vpop.f32.mrf.mxu0 }
 0x1bd   : > { %2718 = vmatmul.bf16.vlgmr.msra.gmra.mxu1 %v5258_v16  ;;  %v4089_v5 = vld [vmem:[%s4769_s29 + $0x9c] sm:$0xf]  ;;  %v3930_v9 = vor.u32 %v4289_v44, %v3927_v18  ;;  %v712_v18 = vld [vmem:[#allocation8 + $0x18] sm:$0xff] }
 0x1be   : > { %2762 = vmatpush.bf16.msrb.mxu1 %v3546_v50  ;;  %2776 = vmatpush.bf16.msrb.mxu2 %v3770_v28  ;;  %v3127_v6 = vld [vmem:[%s4769_s29 + $0xb8] sm:$0xf0]  ;;  %v2525_v51 = vadd.f32 %v2524_v24, %v2512_v15  ;;  %v2537_v21 = vpop.f32.mrf.mxu3 }
 0x1bf   : > { %v4153_v10 = vld [vmem:[%s4769_s29 + $0x29c] sm:$0xf]  ;;  %v3130_v27 = vor.u32 %v4089_v5, %v3127_v6 }
 0x1c0   : > { %2789 = vmatpush.bf16.msrb.mxu3 %v4026_v52  ;;  %2751 = vmatpush.bf16.msrb.mxu0 %v3226_v0  ;;  %v4217_v23 = vld [vmem:[%s4769_s29 + $0x49c] sm:$0xf]  ;;  %v2538_v54 = vadd.f32 %v2537_v21, %v2525_v51 }
 0x1c1   : > { %v3639_v50 = vld [vmem:[%s4769_s29 + $0x4b8] sm:$0xf0] }
 0x1c2   : > { %2763 = vmatpush.bf16.msrb.mxu1 %v3514_v35  ;;  %2777 = vmatpush.bf16.msrb.mxu2 %v3738_v53  ;;  %v3383_v20 = vld [vmem:[%s4769_s29 + $0x2b8] sm:$0xf0]  ;;  %v3642_v46 = vor.u32 %v4217_v23, %v3639_v50  ;;  %v2513_v62 = vpop.f32.mrf.mxu1 }
 0x1c3   : > { %v4281_v26 = vld [vmem:[%s4769_s29 + $0x69c] sm:$0xf]  ;;  %v3386_v34 = vor.u32 %v4153_v10, %v3383_v20  ;;  %v713_v10 = vld [vmem:[#allocation8 + $0x20] sm:$0xff] }
 0x1c4   : > { %2790 = vmatpush.bf16.msrb.mxu3 %v3994_v38  ;;  %2752 = vmatpush.bf16.msrb.mxu0 %v3194_v11  ;;  %v3895_v42 = vld [vmem:[%s4769_s29 + $0x6b8] sm:$0xf0]  ;;  %v2526_v3 = vpop.f32.mrf.mxu2 }
 0x1c5   : > { %v4081_v47 = vld [vmem:[%s4769_s29 + $0x5c] sm:$0xf]  ;;  %v3898_v35 = vor.u32 %v4281_v26, %v3895_v42 }
 0x1c6   : > { %2764 = vmatpush.bf16.msrb.mxu1 %v3482_v56  ;;  %2778 = vmatpush.bf16.msrb.mxu2 %v3706_v32  ;;  %v3095_v28 = vld [vmem:[%s4769_s29 + $0x78] sm:$0xf0]  ;;  %v2539_v32 = vpop.f32.mrf.mxu3 }
 0x1c7   : > { %v711_v37 = vld [vmem:[#allocation8 + $0x10] sm:$0xff]  ;;  %v3098_v61 = vor.u32 %v4081_v47, %v3095_v28  ;;  %v714_v28 = vld [vmem:[#allocation8 + $0x28] sm:$0xff] }
 0x1c8   : > { %2791 = vmatpush.bf16.msrb.mxu3 %v3962_v60  ;;  %2753 = vmatpush.bf16.msrb.mxu0 %v3162_v19  ;;  %v4145_v52 = vld [vmem:[%s4769_s29 + $0x25c] sm:$0xf]  ;;  %v2803_v41 = vadd.f32 %v2538_v54, %v711_v37 }
 0x1c9   : > { %v4209_v57 = vld [vmem:[%s4769_s29 + $0x45c] sm:$0xf] }
 0x1ca   : > { %2765 = vmatpush.bf16.msrb.mxu1 %v3450_v49  ;;  %2779 = vmatpush.bf16.msrb.mxu2 %v3674_v45  ;;  %v3607_v25 = vld [vmem:[%s4769_s29 + $0x478] sm:$0xf0]  ;;  %2811 = vst [vmem:[#allocation8 + $0x10] sm:$0xff] %v2803_v41 }
 0x1cb   : > { %v3351_v43 = vld [vmem:[%s4769_s29 + $0x278] sm:$0xf0]  ;;  %v3610_v0 = vor.u32 %v4209_v57, %v3607_v25 }
 0x1cc   : > { %2792 = vmatpush.bf16.msrb.mxu3 %v3930_v9  ;;  %v4273_v30 = vld [vmem:[%s4769_s29 + $0x65c] sm:$0xf]  ;;  %2754 = vmatpush.bf16.msrb.mxu0 %v3130_v27  ;;  %v3354_v31 = vor.u32 %v4145_v52, %v3351_v43 }
 0x1cd   : > { %v3863_v36 = vld [vmem:[%s4769_s29 + $0x678] sm:$0xf0] }
 0x1ce   : > { %2766 = vmatpush.bf16.msrb.mxu1 %v3418_v8  ;;  %2780 = vmatpush.bf16.msrb.mxu2 %v3642_v46  ;;  %v4073_v53 = vld [vmem:[%s4769_s29 + $0x1c] sm:$0xf]  ;;  %v3866_v56 = vor.u32 %v4273_v30, %v3863_v36 }
 0x1cf   : > { %v3063_v55 = vld [vmem:[%s4769_s29 + $0x38] sm:$0xf0] }
 0x1d0   : > { %v4137_v33 = vld [vmem:[%s4769_s29 + $0x21c] sm:$0xf]  ;;  %2793 = vmatpush.bf16.msrb.mxu3 %v3898_v35  ;;  %2755 = vmatpush.bf16.msrb.mxu0 %v3098_v61  ;;  %v3066_v11 = vor.u32 %v4073_v53, %v3063_v55 }
 0x1d1   : > { %v4201_v38 = vld [vmem:[%s4769_s29 + $0x41c] sm:$0xf] }
 0x1d2   : > { %2767 = vmatpush.bf16.msrb.mxu1 %v3386_v34  ;;  %v3575_v1 = vld [vmem:[%s4769_s29 + $0x438] sm:$0xf0]  ;;  %2781 = vmatpush.bf16.msrb.mxu2 %v3610_v0 }
 0x1d3   : > { %v3319_v59 = vld [vmem:[%s4769_s29 + $0x238] sm:$0xf0]  ;;  %v3578_v39 = vor.u32 %v4201_v38, %v3575_v1 }
 0x1d4   : > { %v4265_v63 = vld [vmem:[%s4769_s29 + $0x61c] sm:$0xf]  ;;  %2794 = vmatpush.bf16.msrb.mxu3 %v3866_v56  ;;  %v3322_v13 = vor.u32 %v4137_v33, %v3319_v59  ;;  %2756 = vmatpush.bf16.msrb.mxu0 %v3066_v11  ;;  %v2550_v49 = vpop.f32.mrf.mxu0  ;;  %v716_v11 = vld [vmem:[#allocation8 + $0x38] sm:$0xff] }
 0x1d5   : > { %v3831_v2 = vld [vmem:[%s4769_s29 + $0x638] sm:$0xf0] }
 0x1d6   : > { %2768 = vmatpush.bf16.msrb.mxu1 %v3354_v31  ;;  %v3834_v14 = vor.u32 %v4265_v63, %v3831_v2  ;;  %2782 = vmatpush.bf16.msrb.mxu2 %v3578_v39  ;;  %v715_v41 = vld [vmem:[#allocation8 + $0x30] sm:$0xff] }
 0x1d7   : > { %2757 = vmatmul.bf16.vlgmr.msrb.gmra.mxu0 %v5207_v22 }
 0x1d8   : > { %2795 = vmatpush.bf16.msrb.mxu3 %v3834_v14 }
 0x1d9   : > { %2783 = vmatmul.bf16.vlgmr.msrb.gmra.mxu2 %v5115_v58 }
 0x1da   : > { %2769 = vmatpush.bf16.msrb.mxu1 %v3322_v13  ;;  %v2563_v60 = vpop.f32.mrf.mxu1 }
 0x1db   : > { %2796 = vmatmul.bf16.vlgmr.msrb.gmra.mxu3 %v5165_v48  ;;  %v2564_v40 = vadd.f32 %v2563_v60, %v2550_v49 }
 0x1dc   : > { %v2576_v12 = vpop.f32.mrf.mxu2  ;;  %v2552_v44 = vpop.f32.mrf.mxu0 }
 0x1dd   : > { %2770 = vmatmul.bf16.vlgmr.msrb.gmra.mxu1 %v5258_v16  ;;  %v2577_v4 = vadd.f32 %v2576_v12, %v2564_v40 }
 0x1de   : > { %v2589_v17 = vpop.f32.mrf.mxu3 }
 0x1df   : > { %v2590_v19 = vadd.f32 %v2589_v17, %v2577_v4 }
 0x1e1   : > { %v2804_v45 = vadd.f32 %v2590_v19, %v712_v18 }
 0x1e2   : > { %v2565_v5 = vpop.f32.mrf.mxu1 }
 0x1e3   : > { %2812 = vst [vmem:[#allocation8 + $0x18] sm:$0xff] %v2804_v45 }
 0x1e4   : > { %v2578_v6 = vpop.f32.mrf.mxu2 }
 0x1e6   : > { %v2591_v22 = vpop.f32.mrf.mxu3 }
 0x1f4   : > { %v2602_v7 = vpop.f32.mrf.mxu0 }
 0x1fa   : > { %v2615_v58 = vpop.f32.mrf.mxu1 }
 0x1fb   : > { %v2616_v8 = vadd.f32 %v2615_v58, %v2602_v7 }
 0x1fc   : > { %v2628_v16 = vpop.f32.mrf.mxu2  ;;  %v2604_v15 = vpop.f32.mrf.mxu0 }
 0x1fd   : > { %v2629_v9 = vadd.f32 %v2628_v16, %v2616_v8 }
 0x1fe   : > { %v2641_v48 = vpop.f32.mrf.mxu3 }
 0x1ff   : > { %v2642_v23 = vadd.f32 %v2641_v48, %v2629_v9 }
 0x201   : > { %v2805_v50 = vadd.f32 %v2642_v23, %v713_v10 }
 0x202   : > { %v2617_v20 = vpop.f32.mrf.mxu1 }
 0x203   : > { %2813 = vst [vmem:[#allocation8 + $0x20] sm:$0xff] %v2805_v50 }
 0x204   : > { %v2630_v26 = vpop.f32.mrf.mxu2 }
 0x206   : > { %v2643_v42 = vpop.f32.mrf.mxu3 }
 0x214   : > { %v2654_v24 = vpop.f32.mrf.mxu0 }
 0x21a   : > { %v2667_v27 = vpop.f32.mrf.mxu1 }
 0x21b   : > { %v2668_v51 = vadd.f32 %v2667_v27, %v2654_v24 }
 0x21c   : > { %v2680_v21 = vpop.f32.mrf.mxu2  ;;  %v2656_v29 = vpop.f32.mrf.mxu0 }
 0x21d   : > { %v2681_v46 = vadd.f32 %v2680_v21, %v2668_v51 }
 0x21e   : > { %v2693_v47 = vpop.f32.mrf.mxu3 }
 0x21f   : > { %v2694_v37 = vadd.f32 %v2693_v47, %v2681_v46 }
 0x221   : > { %v2806_v34 = vadd.f32 %v2694_v37, %v714_v28 }
 0x222   : > { %v2669_v35 = vpop.f32.mrf.mxu1 }
 0x223   : > { %2814 = vst [vmem:[#allocation8 + $0x28] sm:$0xff] %v2806_v34 }
 0x224   : > { %v2682_v52 = vpop.f32.mrf.mxu2 }
 0x226   : > { %v2695_v57 = vpop.f32.mrf.mxu3 }
 0x234   : > { %v2706_v54 = vpop.f32.mrf.mxu0 }
 0x23a   : > { %v2719_v25 = vpop.f32.mrf.mxu1 }
 0x23b   : > { %v2720_v43 = vadd.f32 %v2719_v25, %v2706_v54 }
 0x23c   : > { %v2732_v30 = vpop.f32.mrf.mxu2  ;;  %v2708_v55 = vpop.f32.mrf.mxu0 }
 0x23d   : > { %v2733_v61 = vadd.f32 %v2732_v30, %v2720_v43 }
 0x23e   : > { %v2745_v36 = vpop.f32.mrf.mxu3 }
 0x23f   : > { %v2746_v0 = vadd.f32 %v2745_v36, %v2733_v61 }
 0x241   : > { %v2807_v33 = vadd.f32 %v2746_v0, %v715_v41 }
 0x242   : > { %v2721_v53 = vpop.f32.mrf.mxu1 }
 0x243   : > { %2815 = vst [vmem:[#allocation8 + $0x30] sm:$0xff] %v2807_v33 }
 0x244   : > { %v2734_v62 = vpop.f32.mrf.mxu2 }
 0x246   : > { %v2747_v31 = vpop.f32.mrf.mxu3 }
 0x254   : > { %v2758_v56 = vpop.f32.mrf.mxu0 }
 0x25a   : > { %v2771_v38 = vpop.f32.mrf.mxu1 }
 0x25b   : > { %v2772_v1 = vadd.f32 %v2771_v38, %v2758_v56 }
 0x25c   : > { %v2784_v59 = vpop.f32.mrf.mxu2  ;;  %v2760_v3 = vpop.f32.mrf.mxu0 }
 0x25d   : > { %v2785_v63 = vadd.f32 %v2784_v59, %v2772_v1 }
 0x25e   : > { %v2797_v2 = vpop.f32.mrf.mxu3 }
 0x25f   : > { %v2798_v32 = vadd.f32 %v2797_v2, %v2785_v63 }
 0x261   : > { %v2808_v13 = vadd.f32 %v2798_v32, %v716_v11 }
 0x262   : > { %v2773_v39 = vpop.f32.mrf.mxu1  ;;  %2820 = sbr.rel (%p4059_p4) target bundleno = 778 (0x30a), region = 52 }
 0x263   : > { %2816 = vst [vmem:[#allocation8 + $0x38] sm:$0xff] %v2808_v13 }
 0x264   : > { %v2786_v14 = vpop.f32.mrf.mxu2 }
 0x266   : > { %v2799_v49 = vpop.f32.mrf.mxu3 }
 0x267   : > { %v2821_v60 = vld [vmem:[#allocation8] sm:$0xff]  ;;  %v2822_v40 = vld [vmem:[#allocation8 + $0x8] sm:$0xff]  ;;  %v2823_v12 = vld [vmem:[#allocation8 + $0x10] sm:$0xff] }
 0x268   : > { %v2824_v4 = vld [vmem:[#allocation8 + $0x18] sm:$0xff]  ;;  %v2829_v17 = vmul.f32 %v2821_v60, %v2821_v60  ;;  %v2830_v44 = vmul.f32 %v2822_v40, %v2822_v40  ;;  %v2831_v18 = vmul.f32 %v2823_v12, %v2823_v12  ;;  %v2825_v19 = vld [vmem:[#allocation8 + $0x20] sm:$0xff]  ;;  %v2826_v6 = vld [vmem:[#allocation8 + $0x28] sm:$0xff] }
 0x269   : > { %v2832_v45 = vmul.f32 %v2824_v4, %v2824_v4  ;;  %v2833_v22 = vmul.f32 %v2825_v19, %v2825_v19  ;;  %v2827_v58 = vld [vmem:[#allocation8 + $0x30] sm:$0xff]  ;;  %v2834_v8 = vmul.f32 %v2826_v6, %v2826_v6 }
 0x26a   : > { %v2837_v5 = vadd.f32 %v2830_v44, %v2829_v17  ;;  %v2828_v9 = vld [vmem:[#allocation8 + $0x38] sm:$0xff]  ;;  %v2835_v48 = vmul.f32 %v2827_v58, %v2827_v58 }
 0x26b   : > { %v2836_v23 = vmul.f32 %v2828_v9, %v2828_v9 }
 0x26c   : > { %v2838_v7 = vadd.f32 %v2837_v5, %v2831_v18 }
 0x26e   : > { %v2839_v16 = vadd.f32 %v2838_v7, %v2832_v45 }
 0x270   : > { %v2840_v10 = vadd.f32 %v2839_v16, %v2833_v22 }
 0x272   : > { %v2841_v50 = vadd.f32 %v2840_v10, %v2834_v8 }
 0x274   : > { %v2842_v15 = vadd.f32 %v2841_v50, %v2835_v48 }
 0x276   : > { %v2843_v20 = vadd.f32 %v2842_v15, %v2836_v23 }
 0x278   : > { %2844 = vadd.xlane.f32.xlu0 %v2843_v20 }
 0x2eb   : > { %v2845_v26 = vpop.xlane.xlu0 %2844 }
 0x2ec   : > { %v2846_v42 = vmax.f32 %v2845_v26, 1e-24 }
 0x2ee   : > { %4402 = vrsqrt.f32 %v2846_v42  ;;  %vm2853_vm9 = vweird.f32 %v2846_v42 }
 0x2f4   : > { %v4403_v24 = vpop.eup %4402 }
 0x2f5   : > { %v2848_v27 = vmul.f32 %v4403_v24, %v2846_v42  ;;  %vm2854_vm8 = vweird.f32 %v4403_v24 }
 0x2f6   : > { %vm2855_vm10 = vmor %vm2853_vm9, %vm2854_vm8 }
 0x2f7   : > { %v2849_v51 = vmul.f32 %v4403_v24, %v2848_v27 }
 0x2f9   : > { %v2850_v21 = vmul.f32 0.5, %v2849_v51 }
 0x2fb   : > { %v2851_v46 = vsub.f32 1.5, %v2850_v21 }
 0x2fd   : > { %v2852_v47 = vmul.f32 %v4403_v24, %v2851_v46 }
 0x2ff   : > { %v2856_v28 = vsel %vm2855_vm10, %v4403_v24, %v2852_v47 }
 0x300   : > { %v2857_v37 = vmul.f32 %v2856_v28, %v2821_v60  ;;  %v2858_v29 = vmul.f32 %v2856_v28, %v2822_v40  ;;  %v2859_v34 = vmul.f32 %v2856_v28, %v2823_v12  ;;  %v2860_v35 = vmul.f32 %v2856_v28, %v2824_v4 }
 0x301   : > { %v2861_v52 = vmul.f32 %v2856_v28, %v2825_v19  ;;  %v2862_v57 = vmul.f32 %v2856_v28, %v2826_v6  ;;  %v2863_v25 = vmul.f32 %v2856_v28, %v2827_v58  ;;  %v2864_v54 = vmul.f32 %v2856_v28, %v2828_v9 }
 0x302   : > { %2865 = vst [vmem:[#allocation8] sm:$0xff] %v2857_v37 }
 0x303   : > { %2866 = vst [vmem:[#allocation8 + $0x8] sm:$0xff] %v2858_v29 }
 0x304   : > { %2867 = vst [vmem:[#allocation8 + $0x10] sm:$0xff] %v2859_v34 }
 0x305   : > { %2868 = vst [vmem:[#allocation8 + $0x18] sm:$0xff] %v2860_v35 }
 0x306   : > { %2869 = vst [vmem:[#allocation8 + $0x20] sm:$0xff] %v2861_v52 }
 0x307   : > { %2870 = vst [vmem:[#allocation8 + $0x28] sm:$0xff] %v2862_v57 }
 0x308   : > { %2871 = vst [vmem:[#allocation8 + $0x30] sm:$0xff] %v2863_v25 }
 0x309   : > { %2872 = vst [vmem:[#allocation8 + $0x38] sm:$0xff] %v2864_v54 }
 0x30a PF: > { %s2886_s11 = sshll.u32 %s5721_s3, 4  ;;  %s4607_s25 = smov [#allocation8]   ;;  %s2887_s11 = int_to_ptr.hbm [resolvable:$true] %s2886_s11 }
 0x30b   : > { %s2884_s7 = sshll.u32 %s4607_s25, 4  ;;  %p5741_p6 = scmp.eq.s32.totalorder %s4654_s19, 1  ;;  %s2885_s7 = int_to_ptr.vmem [resolvable:$true] %s2884_s7 }
 0x30c   : > { %s4326_s12 = sshll.u32 %s4654_s19, 5  ;;  %s2899_s14 = sshll.u32 %s4780_s23, 4  ;;  %s2900_s14 = int_to_ptr.vmem [resolvable:$true] %s2899_s14 }
 0x30d   : > { %4336 = dma.vmem_to_hbm [thread:$0]  (%p5741_p6), %s2885_s7, 1024, %s2887_s11, [#allocation4]  }
 0x30e   : > { %s2897_s30 = scalar_lea.hbm %s5722_s4, %s4326_s12  ;;  %s2874_s6 = scalar_lea.sflag [#allocation10], %s4757_s24 }
 0x30f   : > { %s2901_s17 = sshll.u32 %s2897_s30, 4  ;;  %s4542_s2 = scalar_lea.hbm %s5722_s4, 64  ;;  %s2902_s17 = int_to_ptr.hbm [resolvable:$true] %s2901_s17 }
 0x310   : > { %s4536_s5 = sshra.s32 %s2902_s17, 4  ;;  %s4537_s5 = int_to_ptr.hbm [resolvable:$true] %s4536_s5 }
 0x311   : > { %s4538_s20 = scalar_lea.hbm %s4537_s5, 32  ;;  %p4543_p1 = scmp.lt.s32.totalorder %s4537_s5, %s5722_s4 }
 0x312   : > { %p4539_p9 = scmp.ne.s32.totalorder %s4537_s5, %s4538_s20  ;;  %p4544_p2 = scmp.lt.s32.totalorder %s4542_s2, %s4538_s20 }
 0x314   : > { %p4540_p10 = pnand %p4539_p9, %p4687_p11  ;;  %p4545_p5 = por %p4544_p2, %p4543_p1 }
 0x316   : > { %p4541_p7 = pneg %p4540_p10 }
 0x318   : > { %p4546_p0 = pnand %p4545_p5, %p4541_p7 }
 0x31a   : > { %4549 = shalt.err (!%p4546_p0)
}
 0x31b   : > { %4337 = dma.vmem_to_hbm [thread:$0]  (%p4687_p11), %s2900_s14, 512, %s2902_s17, %s2874_s6  }
 0x31c   : > { %p5742_p3 = pmov %p5741_p6 }
 0x31e   : > { %4579 = dma.done.wait (%p5742_p3), [#allocation4], 1024   ;;  %p5743_p8 = pmov %p5742_p3 }
 0x320   : > { %4581 = vsyncadd (%p5743_p8), [#allocation4], 4294966272 }
 0x321 PF: > { %s2918_s24 = sand.u32 1, %s4588_s15   ;;  %p5744_p13 = scmp.ge.s32.totalorder %s4600_s18, 2 }
 0x322   : > { %s2919_s10 = scalar_lea.sflag [#allocation10], %s2918_s24 }
 0x323   : > { %p4353_p4 = pnand %p5744_p13, %p4691_p12 }
 0x325   : > { %p4354_p6 = pneg %p4353_p4 }
 0x327   : > { %4583 = dma.done.wait (%p4354_p6), %s2919_s10, 512  }
 0x328   : > { %4585 = vsyncadd (%p4354_p6), %s2919_s10, 4294966784  ;;  %s5745_s18 = sld [smem:[#allocation17_spill]]  ;;  %s5748_s15 = smov %s4592_s16 }
 0x329   : > { %s5746_s27 = sld [smem:[#allocation16_spill]] }
 0x32a   : > { %s5747_s17 = sld [smem:[#allocation18_spill]] }
 0x32e   : > { %p22_p11 = scmp.ge.s32.totalorder %s5745_s18, 4  }
 0x32f   : > { %s5749_s16 = smov %s5746_s27 }
 0x330   :  { %24 = sbr.rel (!%p22_p11) target bundleno = 11 (0xb), region = 111 }
 0x335   :  { %2925 = vsyncpa [#allocation3], 1 }
 0x336   :  { %2927 = vsyncpa [#allocation3 + $0x1], 1 }
 0x337   :  { %2928 = vsyncpa [#allocation6], 1 }
 0x338   :  { %2930 = vsyncpa [#allocation6 + $0x1], 1 }
 0x339   :  { %2931 = vsyncpa [#allocation4], 1 }
 0x33a   :  { %2933 = vsyncpa [#allocation4 + $0x1], 1 }
 0x33b   :  { %2934 = vsyncpa [#allocation10], 1 }
 0x33c   :  { %2936 = vsyncpa [#allocation10 + $0x1], 1 }

</bundles_post_ra>
